<compile_context>
chip_gen: v6e
topology: v6e:2x2x1
jax: 0.10.0
libtpu: 0.0.40
codegen_flags: <defaults>
</compile_context>

<pallas_src>
import jax
import jax.numpy as jnp
from jax.experimental import pallas as pl
from jax.experimental.pallas import tpu as pltpu

BN_EPS = 1e-5


# ------------------------------- kernels ------------------------------------

def _conv_tail(w_ref, y_ref, ssum_ref, ssq_ref, pad_ref, Hh, Wh):
    """3x3 conv from the zero-padded VMEM tile + BN batch-stat partial sums."""
    patches = []
    for dy in range(3):                       # statically unrolled taps
        for dx in range(3):
            patches.append(pad_ref[dy:dy + Hh, dx:dx + Wh, :])
    # im2col: one (Hh*Wh, 9*Cin) x (9*Cin, Cout) MXU contraction instead of
    # nine K=Cin matmuls.
    slab = jnp.concatenate(patches, axis=-1).astype(jnp.bfloat16)
    acc = jax.lax.dot_general(
        slab, w_ref[...],
        dimension_numbers=(((2,), (0,)), ((), ())),
        preferred_element_type=jnp.float32)                 # (Hh, Wh, Cout) f32
    yb = acc.astype(y_ref.dtype)
    y_ref[0] = yb
    # BN batch statistics of exactly what the next stage will read back.
    yf = yb.astype(jnp.float32)
    ssum_ref[...] = jnp.sum(yf, axis=(0, 1)).reshape(1, 1, -1)
    ssq_ref[...] = jnp.sum(yf * yf, axis=(0, 1)).reshape(1, 1, -1)


def _pool_conv_stats_kernel(x_ref, w_ref, y_ref, ssum_ref, ssq_ref, pad_ref):
    # x_ref: (1, Hh, 2, Wh, 2*Cin)  full-res input, W-pairs folded into lanes
    # w_ref: (9*Cin, Cmid) bf16     y_ref: (1, Hh, Wh, Cmid) bf16
    # ssum/ssq_ref: (1, 1, Cmid) f32   pad_ref: (Hh+2, Wh+2, Cin) f32 scratch
    Hh, Wh = y_ref.shape[1], y_ref.shape[2]
    Cin = pad_ref.shape[2]
    # fused 2x2 max-pool: two lane-dense VPU maxima
    m = jnp.maximum(x_ref[0, :, 0], x_ref[0, :, 1])      # (Hh, Wh, 2*Cin): H pairs
    p = jnp.maximum(m[:, :, :Cin], m[:, :, Cin:])        # (Hh, Wh, Cin):   W pairs
    # zero-pad the 1-pixel halo in VMEM (no HBM padded copy)
    pad_ref[...] = jnp.zeros(pad_ref.shape, pad_ref.dtype)
    pad_ref[1:Hh + 1, 1:Wh + 1, :] = p
    _conv_tail(w_ref, y_ref, ssum_ref, ssq_ref, pad_ref, Hh, Wh)


def _bnrelu_conv_stats_kernel(y_ref, s_ref, t_ref, w_ref, z_ref, ssum_ref,
                              ssq_ref, pad_ref):
    # Applies the previous layer's BN(scale/shift)+ReLU while reading its
    # pre-BN output, then the same padded-conv + stats tail.
    Hh, Wh = z_ref.shape[1], z_ref.shape[2]
    a = y_ref[0].astype(jnp.float32)
    a = jnp.maximum(a * s_ref[0][None, None, :] + t_ref[0][None, None, :], 0.0)
    pad_ref[...] = jnp.zeros(pad_ref.shape, pad_ref.dtype)
    pad_ref[1:Hh + 1, 1:Wh + 1, :] = a
    _conv_tail(w_ref, z_ref, ssum_ref, ssq_ref, pad_ref, Hh, Wh)


def _bnrelu_kernel(z_ref, s_ref, t_ref, o_ref):
    z = z_ref[0].astype(jnp.float32)
    o_ref[0] = jnp.maximum(
        z * s_ref[0][None, None, :] + t_ref[0][None, None, :], 0.0
    ).astype(o_ref.dtype)


# ------------------------------- wrappers ------------------------------------

def pool_conv_stats(x, w):
    # x: (B, H, W, Cin) f32;  w: (9*Cin, Cmid) bf16
    B, H, W, Cin = x.shape
    Hh, Wh = H // 2, W // 2
    K, Cmid = w.shape
    xr = x.reshape(B, Hh, 2, Wh, 2 * Cin)          # free view (same bytes)
    return pl.pallas_call(
        _pool_conv_stats_kernel,
        out_shape=(
            jax.ShapeDtypeStruct((B, Hh, Wh, Cmid), jnp.bfloat16),
            jax.ShapeDtypeStruct((B, 1, Cmid), jnp.float32),
            jax.ShapeDtypeStruct((B, 1, Cmid), jnp.float32),
        ),
        grid=(B,),
        in_specs=[
            pl.BlockSpec((1, Hh, 2, Wh, 2 * Cin), lambda b: (b, 0, 0, 0, 0)),
            pl.BlockSpec((K, Cmid), lambda b: (0, 0)),
        ],
        out_specs=(
            pl.BlockSpec((1, Hh, Wh, Cmid), lambda b: (b, 0, 0, 0)),
            pl.BlockSpec((1, 1, Cmid), lambda b: (b, 0, 0)),
            pl.BlockSpec((1, 1, Cmid), lambda b: (b, 0, 0)),
        ),
        scratch_shapes=[pltpu.VMEM((Hh + 2, Wh + 2, Cin), jnp.float32)],
        compiler_params=pltpu.CompilerParams(dimension_semantics=("parallel",)),
    )(xr, w)


def bnrelu_conv_stats(y, scale, shift, w):
    # y: (B, Hh, Wh, Cmid) bf16 pre-BN; scale/shift: (1, Cmid) f32; w: (9*Cmid, Cout) bf16
    B, Hh, Wh, Cmid = y.shape
    K, Cout = w.shape
    return pl.pallas_call(
        _bnrelu_conv_stats_kernel,
        out_shape=(
            jax.ShapeDtypeStruct((B, Hh, Wh, Cout), jnp.bfloat16),
            jax.ShapeDtypeStruct((B, 1, Cout), jnp.float32),
            jax.ShapeDtypeStruct((B, 1, Cout), jnp.float32),
        ),
        grid=(B,),
        in_specs=[
            pl.BlockSpec((1, Hh, Wh, Cmid), lambda b: (b, 0, 0, 0)),
            pl.BlockSpec((1, Cmid), lambda b: (0, 0)),
            pl.BlockSpec((1, Cmid), lambda b: (0, 0)),
            pl.BlockSpec((K, Cout), lambda b: (0, 0)),
        ],
        out_specs=(
            pl.BlockSpec((1, Hh, Wh, Cout), lambda b: (b, 0, 0, 0)),
            pl.BlockSpec((1, 1, Cout), lambda b: (b, 0, 0)),
            pl.BlockSpec((1, 1, Cout), lambda b: (b, 0, 0)),
        ),
        scratch_shapes=[pltpu.VMEM((Hh + 2, Wh + 2, Cmid), jnp.float32)],
        compiler_params=pltpu.CompilerParams(dimension_semantics=("parallel",)),
    )(y, scale, shift, w)


def bn_relu_apply(z, scale, shift):
    B, Hh, Wh, C = z.shape
    return pl.pallas_call(
        _bnrelu_kernel,
        out_shape=jax.ShapeDtypeStruct((B, Hh, Wh, C), jnp.float32),
        grid=(B,),
        in_specs=[
            pl.BlockSpec((1, Hh, Wh, C), lambda b: (b, 0, 0, 0)),
            pl.BlockSpec((1, C), lambda b: (0, 0)),
            pl.BlockSpec((1, C), lambda b: (0, 0)),
        ],
        out_specs=pl.BlockSpec((1, Hh, Wh, C), lambda b: (b, 0, 0, 0)),
        compiler_params=pltpu.CompilerParams(dimension_semantics=("parallel",)),
    )(z, scale, shift)


def _bn_scale_shift(ssum, ssq, count, gamma, beta):
    # Tiny per-channel glue: fold partial sums into train-mode BN scale/shift.
    mean = jnp.sum(ssum, axis=(0, 1)) / count
    var = jnp.maximum(jnp.sum(ssq, axis=(0, 1)) / count - mean * mean, 0.0)
    scale = gamma * jax.lax.rsqrt(var + BN_EPS)
    shift = beta - mean * scale
    return scale.reshape(1, -1), shift.reshape(1, -1)


def down_forward(x_nchw, params):
    """Down.forward: MaxPool2d(2) -> DoubleConv. Input NCHW, output NCHW."""
    x = jnp.transpose(x_nchw, (0, 2, 3, 1))               # NCHW -> NHWC
    B, H, W, _ = x.shape
    count = float(B * (H // 2) * (W // 2))

    y1, s1, q1 = pool_conv_stats(x, params["w1"])
    sc1, sh1 = _bn_scale_shift(s1, q1, count, params["g1"], params["be1"])

    y2, s2, q2 = bnrelu_conv_stats(y1, sc1, sh1, params["w2"])
    sc2, sh2 = _bn_scale_shift(s2, q2, count, params["g2"], params["be2"])

    out = bn_relu_apply(y2, sc2, sh2)
    return jnp.transpose(out, (0, 3, 1, 2))                # NHWC -> NCHW


def init_params(key, in_channels, out_channels, mid_channels=None):
    mid = out_channels if mid_channels is None else mid_channels
    k1, k2 = jax.random.split(key)
    w1 = 0.1 * jax.random.normal(k1, (3, 3, in_channels, mid), jnp.float32)
    w2 = 0.1 * jax.random.normal(k2, (3, 3, mid, out_channels), jnp.float32)
    # Conv biases are omitted: bias followed by train-mode BatchNorm cancels
    # exactly in the normalization, so the forward output is unchanged.
    return dict(
        w1=w1.reshape(9 * in_channels, mid).astype(jnp.bfloat16),
        g1=jnp.ones((mid,), jnp.float32),
        be1=jnp.zeros((mid,), jnp.float32),
        w2=w2.reshape(9 * mid, out_channels).astype(jnp.bfloat16),
        g2=jnp.ones((out_channels,), jnp.float32),
        be2=jnp.zeros((out_channels,), jnp.float32),
    )


if __name__ == "__main__":
    key = jax.random.PRNGKey(0)
    kx, kp = jax.random.split(key)

    B, Cin, H, W = 2, 4, 16, 16
    Cout = 8
    x = jax.random.normal(kx, (B, Cin, H, W), jnp.float32)   # NCHW like PyTorch
    params = init_params(kp, Cin, Cout)

    out = jax.jit(down_forward)(x, params)
    out = jax.block_until_ready(out)

    assert out.shape == (B, Cout, H // 2, W // 2), out.shape
    assert bool(jnp.all(jnp.isfinite(out)))
    assert bool(jnp.all(out >= 0.0))   # final ReLU
    print("KERNEL_OK")
</pallas_src>

<mosaic_0001>
module attributes {stable_mosaic.version = 11 : i64} {
  func.func @_pool_conv_stats_kernel(%arg0: i32, %arg1: memref<1x8x2x8x8xf32, #tpu.memory_space<vmem>>, %arg2: memref<36x8xbf16, #tpu.memory_space<vmem>>, %arg3: memref<1x8x8x8xbf16, #tpu.memory_space<vmem>>, %arg4: memref<1x1x8xf32, #tpu.memory_space<vmem>>, %arg5: memref<1x1x8xf32, #tpu.memory_space<vmem>>, %arg6: memref<10x10x4xf32, #tpu.memory_space<vmem>>) attributes {dimension_semantics = [#tpu.dimension_semantics<parallel>], iteration_bounds = array<i64: 2>, scalar_prefetch = 0 : i64, scratch_operands = 1 : i64, tpu.core_type = #tpu.core_type<tc>, window_params = [{transform_indices = @transform_0, window_bounds = array<i64: 1, 8, 2, 8, 8>}, {pipeline_mode = #tpu.pipeline_mode<synchronous>, transform_indices = @transform_1, window_bounds = array<i64: 36, 8>}, {transform_indices = @transform_2, window_bounds = array<i64: 1, 8, 8, 8>}, {transform_indices = @transform_3, window_bounds = array<i64: 1, 1, 8>}, {transform_indices = @transform_4, window_bounds = array<i64: 1, 1, 8>}]} {
    %c0 = arith.constant 0 : index
    %c0_0 = arith.constant 0 : index
    %c0_1 = arith.constant 0 : index
    %c0_2 = arith.constant 0 : index
    %c0_3 = arith.constant 0 : index
    %0 = vector.load %arg1[%c0, %c0_0, %c0_1, %c0_2, %c0_3] : memref<1x8x2x8x8xf32, #tpu.memory_space<vmem>>, vector<1x8x1x8x8xf32>
    %1 = vector.shape_cast %0 : vector<1x8x1x8x8xf32> to vector<8x8x8xf32>
    %c0_4 = arith.constant 0 : index
    %c0_5 = arith.constant 0 : index
    %c1 = arith.constant 1 : index
    %c0_6 = arith.constant 0 : index
    %c0_7 = arith.constant 0 : index
    %2 = vector.load %arg1[%c0_4, %c0_5, %c1, %c0_6, %c0_7] : memref<1x8x2x8x8xf32, #tpu.memory_space<vmem>>, vector<1x8x1x8x8xf32>
    %3 = vector.shape_cast %2 : vector<1x8x1x8x8xf32> to vector<8x8x8xf32>
    %4 = arith.maximumf %1, %3 : vector<8x8x8xf32>
    %5 = vector.extract_strided_slice %4 {offsets = [0, 0, 0], sizes = [8, 8, 4], strides = [1, 1, 1]} : vector<8x8x8xf32> to vector<8x8x4xf32>
    %6 = vector.extract_strided_slice %4 {offsets = [0, 0, 4], sizes = [8, 8, 4], strides = [1, 1, 1]} : vector<8x8x8xf32> to vector<8x8x4xf32>
    %7 = arith.maximumf %5, %6 : vector<8x8x4xf32>
    %cst = arith.constant 0.000000e+00 : f32
    %8 = vector.broadcast %cst : f32 to vector<10x10x4xf32>
    %c0_8 = arith.constant 0 : index
    %c0_9 = arith.constant 0 : index
    %c0_10 = arith.constant 0 : index
    %9 = vector.load %arg6[%c0_8, %c0_9, %c0_10] : memref<10x10x4xf32, #tpu.memory_space<vmem>>, vector<10x10x4xf32>
    tpu.vector_store %arg6[%c0_8, %c0_9, %c0_10], %8 {strides = array<i32>} : memref<10x10x4xf32, #tpu.memory_space<vmem>>, vector<10x10x4xf32>,
    %c1_11 = arith.constant 1 : index
    %c1_12 = arith.constant 1 : index
    %c0_13 = arith.constant 0 : index
    %10 = vector.load %arg6[%c1_11, %c1_12, %c0_13] : memref<10x10x4xf32, #tpu.memory_space<vmem>>, vector<8x8x4xf32>
    tpu.vector_store %arg6[%c1_11, %c1_12, %c0_13], %7 {strides = array<i32>} : memref<10x10x4xf32, #tpu.memory_space<vmem>>, vector<8x8x4xf32>,
    %c0_14 = arith.constant 0 : index
    %c0_15 = arith.constant 0 : index
    %c0_16 = arith.constant 0 : index
    %11 = vector.load %arg6[%c0_14, %c0_15, %c0_16] : memref<10x10x4xf32, #tpu.memory_space<vmem>>, vector<8x8x4xf32>
    %c0_17 = arith.constant 0 : index
    %c1_18 = arith.constant 1 : index
    %c0_19 = arith.constant 0 : index
    %12 = vector.load %arg6[%c0_17, %c1_18, %c0_19] : memref<10x10x4xf32, #tpu.memory_space<vmem>>, vector<8x8x4xf32>
    %c0_20 = arith.constant 0 : index
    %c2 = arith.constant 2 : index
    %c0_21 = arith.constant 0 : index
    %13 = vector.load %arg6[%c0_20, %c2, %c0_21] : memref<10x10x4xf32, #tpu.memory_space<vmem>>, vector<8x8x4xf32>
    %c1_22 = arith.constant 1 : index
    %c0_23 = arith.constant 0 : index
    %c0_24 = arith.constant 0 : index
    %14 = vector.load %arg6[%c1_22, %c0_23, %c0_24] : memref<10x10x4xf32, #tpu.memory_space<vmem>>, vector<8x8x4xf32>
    %c1_25 = arith.constant 1 : index
    %c1_26 = arith.constant 1 : index
    %c0_27 = arith.constant 0 : index
    %15 = vector.load %arg6[%c1_25, %c1_26, %c0_27] : memref<10x10x4xf32, #tpu.memory_space<vmem>>, vector<8x8x4xf32>
    %c1_28 = arith.constant 1 : index
    %c2_29 = arith.constant 2 : index
    %c0_30 = arith.constant 0 : index
    %16 = vector.load %arg6[%c1_28, %c2_29, %c0_30] : memref<10x10x4xf32, #tpu.memory_space<vmem>>, vector<8x8x4xf32>
    %c2_31 = arith.constant 2 : index
    %c0_32 = arith.constant 0 : index
    %c0_33 = arith.constant 0 : index
    %17 = vector.load %arg6[%c2_31, %c0_32, %c0_33] : memref<10x10x4xf32, #tpu.memory_space<vmem>>, vector<8x8x4xf32>
    %c2_34 = arith.constant 2 : index
    %c1_35 = arith.constant 1 : index
    %c0_36 = arith.constant 0 : index
    %18 = vector.load %arg6[%c2_34, %c1_35, %c0_36] : memref<10x10x4xf32, #tpu.memory_space<vmem>>, vector<8x8x4xf32>
    %c2_37 = arith.constant 2 : index
    %c2_38 = arith.constant 2 : index
    %c0_39 = arith.constant 0 : index
    %19 = vector.load %arg6[%c2_37, %c2_38, %c0_39] : memref<10x10x4xf32, #tpu.memory_space<vmem>>, vector<8x8x4xf32>
    %20 = tpu.concatenate %11, %12, %13, %14, %15, %16, %17, %18, %19 in 2 : vector<8x8x4xf32>, vector<8x8x4xf32>, vector<8x8x4xf32>, vector<8x8x4xf32>, vector<8x8x4xf32>, vector<8x8x4xf32>, vector<8x8x4xf32>, vector<8x8x4xf32>, vector<8x8x4xf32> -> vector<8x8x36xf32>
    %21 = arith.truncf %20 : vector<8x8x36xf32> to vector<8x8x36xbf16>
    %c0_40 = arith.constant 0 : index
    %c0_41 = arith.constant 0 : index
    %22 = vector.load %arg2[%c0_40, %c0_41] : memref<36x8xbf16, #tpu.memory_space<vmem>>, vector<36x8xbf16>
    %cst_42 = arith.constant dense<0.000000e+00> : vector<8x8x8xf32>
    %23 = tpu.matmul %21, %22, %cst_42 {dimension_numbers = #tpu.dot_dimension_numbers<[2], [0], [0, 1], [1], [0, 0, 0, 1, 1, 1], [], []>} : vector<8x8x36xbf16>, vector<36x8xbf16>, vector<8x8x8xf32> -> vector<8x8x8xf32>
    %24 = arith.truncf %23 : vector<8x8x8xf32> to vector<8x8x8xbf16>
    %c0_43 = arith.constant 0 : index
    %c0_44 = arith.constant 0 : index
    %c0_45 = arith.constant 0 : index
    %c0_46 = arith.constant 0 : index
    %25 = vector.load %arg3[%c0_43, %c0_44, %c0_45, %c0_46] : memref<1x8x8x8xbf16, #tpu.memory_space<vmem>>, vector<1x8x8x8xbf16>
    %26 = vector.shape_cast %25 : vector<1x8x8x8xbf16> to vector<8x8x8xbf16>
    %27 = vector.shape_cast %24 : vector<8x8x8xbf16> to vector<1x8x8x8xbf16>
    tpu.vector_store %arg3[%c0_43, %c0_44, %c0_45, %c0_46], %27 {strides = array<i32>} : memref<1x8x8x8xbf16, #tpu.memory_space<vmem>>, vector<1x8x8x8xbf16>,
    %28 = arith.extf %24 : vector<8x8x8xbf16> to vector<8x8x8xf32>
    %cst_47 = arith.constant dense<0.000000e+00> : vector<8xf32>
    %29 = vector.multi_reduction <add>, %28, %cst_47 [0, 1] : vector<8x8x8xf32> to vector<8xf32>
    %30 = vector.shape_cast %29 : vector<8xf32> to vector<1x1x8xf32>
    %c0_48 = arith.constant 0 : index
    %c0_49 = arith.constant 0 : index
    %c0_50 = arith.constant 0 : index
    %31 = vector.load %arg4[%c0_48, %c0_49, %c0_50] : memref<1x1x8xf32, #tpu.memory_space<vmem>>, vector<1x1x8xf32>
    tpu.vector_store %arg4[%c0_48, %c0_49, %c0_50], %30 {strides = array<i32>} : memref<1x1x8xf32, #tpu.memory_space<vmem>>, vector<1x1x8xf32>,
    %32 = arith.mulf %28, %28 : vector<8x8x8xf32>
    %cst_51 = arith.constant dense<0.000000e+00> : vector<8xf32>
    %33 = vector.multi_reduction <add>, %32, %cst_51 [0, 1] : vector<8x8x8xf32> to vector<8xf32>
    %34 = vector.shape_cast %33 : vector<8xf32> to vector<1x1x8xf32>
    %c0_52 = arith.constant 0 : index
    %c0_53 = arith.constant 0 : index
    %c0_54 = arith.constant 0 : index
    %35 = vector.load %arg5[%c0_52, %c0_53, %c0_54] : memref<1x1x8xf32, #tpu.memory_space<vmem>>, vector<1x1x8xf32>
    tpu.vector_store %arg5[%c0_52, %c0_53, %c0_54], %34 {strides = array<i32>} : memref<1x1x8xf32, #tpu.memory_space<vmem>>, vector<1x1x8xf32>,
    return
  }
  func.func @transform_0(%arg0: i32) -> (i32, i32, i32, i32, i32) {
    %c0_i32 = arith.constant 0 : i32
    %c0_i32_0 = arith.constant 0 : i32
    %c0_i32_1 = arith.constant 0 : i32
    %c0_i32_2 = arith.constant 0 : i32
    %c0_i32_3 = arith.constant 0 : i32
    return %arg0, %c0_i32, %c0_i32_0, %c0_i32_1, %c0_i32_2 : i32, i32, i32, i32, i32
  }
  func.func @transform_1(%arg0: i32) -> (i32, i32) {
    %c0_i32 = arith.constant 0 : i32
    %c0_i32_0 = arith.constant 0 : i32
    %c0_i32_1 = arith.constant 0 : i32
    return %c0_i32, %c0_i32_0 : i32, i32
  }
  func.func @transform_2(%arg0: i32) -> (i32, i32, i32, i32) {
    %c0_i32 = arith.constant 0 : i32
    %c0_i32_0 = arith.constant 0 : i32
    %c0_i32_1 = arith.constant 0 : i32
    %c0_i32_2 = arith.constant 0 : i32
    return %arg0, %c0_i32, %c0_i32_0, %c0_i32_1 : i32, i32, i32, i32
  }
  func.func @transform_3(%arg0: i32) -> (i32, i32, i32) {
    %c0_i32 = arith.constant 0 : i32
    %c0_i32_0 = arith.constant 0 : i32
    %c0_i32_1 = arith.constant 0 : i32
    return %arg0, %c0_i32, %c0_i32_0 : i32, i32, i32
  }
  func.func @transform_4(%arg0: i32) -> (i32, i32, i32) {
    %c0_i32 = arith.constant 0 : i32
    %c0_i32_0 = arith.constant 0 : i32
    %c0_i32_1 = arith.constant 0 : i32
    return %arg0, %c0_i32, %c0_i32_0 : i32, i32, i32
  }
}

module attributes {stable_mosaic.version = 11 : i64} {
  func.func @_bnrelu_kernel(%arg0: i32, %arg1: memref<1x8x8x8xbf16, #tpu.memory_space<vmem>>, %arg2: memref<1x8xf32, #tpu.memory_space<vmem>>, %arg3: memref<1x8xf32, #tpu.memory_space<vmem>>, %arg4: memref<1x8x8x8xf32, #tpu.memory_space<vmem>>) attributes {dimension_semantics = [#tpu.dimension_semantics<parallel>], iteration_bounds = array<i64: 2>, scalar_prefetch = 0 : i64, scratch_operands = 0 : i64, tpu.core_type = #tpu.core_type<tc>, window_params = [{transform_indices = @transform_0, window_bounds = array<i64: 1, 8, 8, 8>}, {pipeline_mode = #tpu.pipeline_mode<synchronous>, transform_indices = @transform_1, window_bounds = array<i64: 1, 8>}, {pipeline_mode = #tpu.pipeline_mode<synchronous>, transform_indices = @transform_2, window_bounds = array<i64: 1, 8>}, {transform_indices = @transform_3, window_bounds = array<i64: 1, 8, 8, 8>}]} {
    %c0 = arith.constant 0 : index
    %c0_0 = arith.constant 0 : index
    %c0_1 = arith.constant 0 : index
    %c0_2 = arith.constant 0 : index
    %0 = vector.load %arg1[%c0, %c0_0, %c0_1, %c0_2] : memref<1x8x8x8xbf16, #tpu.memory_space<vmem>>, vector<1x8x8x8xbf16>
    %1 = vector.shape_cast %0 : vector<1x8x8x8xbf16> to vector<8x8x8xbf16>
    %2 = arith.extf %1 : vector<8x8x8xbf16> to vector<8x8x8xf32>
    %c0_3 = arith.constant 0 : index
    %c0_4 = arith.constant 0 : index
    %3 = vector.load %arg2[%c0_3, %c0_4] : memref<1x8xf32, #tpu.memory_space<vmem>>, vector<1x8xf32>
    %4 = vector.shape_cast %3 : vector<1x8xf32> to vector<8xf32>
    %5 = vector.shape_cast %4 : vector<8xf32> to vector<1x1x8xf32>
    %6 = vector.broadcast %5 : vector<1x1x8xf32> to vector<8x8x8xf32>
    %7 = arith.mulf %2, %6 : vector<8x8x8xf32>
    %c0_5 = arith.constant 0 : index
    %c0_6 = arith.constant 0 : index
    %8 = vector.load %arg3[%c0_5, %c0_6] : memref<1x8xf32, #tpu.memory_space<vmem>>, vector<1x8xf32>
    %9 = vector.shape_cast %8 : vector<1x8xf32> to vector<8xf32>
    %10 = vector.shape_cast %9 : vector<8xf32> to vector<1x1x8xf32>
    %11 = vector.broadcast %10 : vector<1x1x8xf32> to vector<8x8x8xf32>
    %12 = arith.addf %7, %11 : vector<8x8x8xf32>
    %cst = arith.constant 0.000000e+00 : f32
    %13 = vector.broadcast %cst : f32 to vector<8x8x8xf32>
    %14 = arith.maximumf %12, %13 : vector<8x8x8xf32>
    %c0_7 = arith.constant 0 : index
    %c0_8 = arith.constant 0 : index
    %c0_9 = arith.constant 0 : index
    %c0_10 = arith.constant 0 : index
    %15 = vector.load %arg4[%c0_7, %c0_8, %c0_9, %c0_10] : memref<1x8x8x8xf32, #tpu.memory_space<vmem>>, vector<1x8x8x8xf32>
    %16 = vector.shape_cast %15 : vector<1x8x8x8xf32> to vector<8x8x8xf32>
    %17 = vector.shape_cast %14 : vector<8x8x8xf32> to vector<1x8x8x8xf32>
    tpu.vector_store %arg4[%c0_7, %c0_8, %c0_9, %c0_10], %17 {strides = array<i32>} : memref<1x8x8x8xf32, #tpu.memory_space<vmem>>, vector<1x8x8x8xf32>,
    return
  }
  func.func @transform_0(%arg0: i32) -> (i32, i32, i32, i32) {
    %c0_i32 = arith.constant 0 : i32
    %c0_i32_0 = arith.constant 0 : i32
    %c0_i32_1 = arith.constant 0 : i32
    %c0_i32_2 = arith.constant 0 : i32
    return %arg0, %c0_i32, %c0_i32_0, %c0_i32_1 : i32, i32, i32, i32
  }
  func.func @transform_1(%arg0: i32) -> (i32, i32) {
    %c0_i32 = arith.constant 0 : i32
    %c0_i32_0 = arith.constant 0 : i32
    %c0_i32_1 = arith.constant 0 : i32
    return %c0_i32, %c0_i32_0 : i32, i32
  }
  func.func @transform_2(%arg0: i32) -> (i32, i32) {
    %c0_i32 = arith.constant 0 : i32
    %c0_i32_0 = arith.constant 0 : i32
    %c0_i32_1 = arith.constant 0 : i32
    return %c0_i32, %c0_i32_0 : i32, i32
  }
  func.func @transform_3(%arg0: i32) -> (i32, i32, i32, i32) {
    %c0_i32 = arith.constant 0 : i32
    %c0_i32_0 = arith.constant 0 : i32
    %c0_i32_1 = arith.constant 0 : i32
    %c0_i32_2 = arith.constant 0 : i32
    return %arg0, %c0_i32, %c0_i32_0, %c0_i32_1 : i32, i32, i32, i32
  }
}

module attributes {stable_mosaic.version = 11 : i64} {
  func.func @_bnrelu_conv_stats_kernel(%arg0: i32, %arg1: memref<1x8x8x8xbf16, #tpu.memory_space<vmem>>, %arg2: memref<1x8xf32, #tpu.memory_space<vmem>>, %arg3: memref<1x8xf32, #tpu.memory_space<vmem>>, %arg4: memref<72x8xbf16, #tpu.memory_space<vmem>>, %arg5: memref<1x8x8x8xbf16, #tpu.memory_space<vmem>>, %arg6: memref<1x1x8xf32, #tpu.memory_space<vmem>>, %arg7: memref<1x1x8xf32, #tpu.memory_space<vmem>>, %arg8: memref<10x10x8xf32, #tpu.memory_space<vmem>>) attributes {dimension_semantics = [#tpu.dimension_semantics<parallel>], iteration_bounds = array<i64: 2>, scalar_prefetch = 0 : i64, scratch_operands = 1 : i64, tpu.core_type = #tpu.core_type<tc>, window_params = [{transform_indices = @transform_0, window_bounds = array<i64: 1, 8, 8, 8>}, {pipeline_mode = #tpu.pipeline_mode<synchronous>, transform_indices = @transform_1, window_bounds = array<i64: 1, 8>}, {pipeline_mode = #tpu.pipeline_mode<synchronous>, transform_indices = @transform_2, window_bounds = array<i64: 1, 8>}, {pipeline_mode = #tpu.pipeline_mode<synchronous>, transform_indices = @transform_3, window_bounds = array<i64: 72, 8>}, {transform_indices = @transform_4, window_bounds = array<i64: 1, 8, 8, 8>}, {transform_indices = @transform_5, window_bounds = array<i64: 1, 1, 8>}, {transform_indices = @transform_6, window_bounds = array<i64: 1, 1, 8>}]} {
    %c0 = arith.constant 0 : index
    %c0_0 = arith.constant 0 : index
    %c0_1 = arith.constant 0 : index
    %c0_2 = arith.constant 0 : index
    %0 = vector.load %arg1[%c0, %c0_0, %c0_1, %c0_2] : memref<1x8x8x8xbf16, #tpu.memory_space<vmem>>, vector<1x8x8x8xbf16>
    %1 = vector.shape_cast %0 : vector<1x8x8x8xbf16> to vector<8x8x8xbf16>
    %2 = arith.extf %1 : vector<8x8x8xbf16> to vector<8x8x8xf32>
    %c0_3 = arith.constant 0 : index
    %c0_4 = arith.constant 0 : index
    %3 = vector.load %arg2[%c0_3, %c0_4] : memref<1x8xf32, #tpu.memory_space<vmem>>, vector<1x8xf32>
    %4 = vector.shape_cast %3 : vector<1x8xf32> to vector<8xf32>
    %5 = vector.shape_cast %4 : vector<8xf32> to vector<1x1x8xf32>
    %6 = vector.broadcast %5 : vector<1x1x8xf32> to vector<8x8x8xf32>
    %7 = arith.mulf %2, %6 : vector<8x8x8xf32>
    %c0_5 = arith.constant 0 : index
    %c0_6 = arith.constant 0 : index
    %8 = vector.load %arg3[%c0_5, %c0_6] : memref<1x8xf32, #tpu.memory_space<vmem>>, vector<1x8xf32>
    %9 = vector.shape_cast %8 : vector<1x8xf32> to vector<8xf32>
    %10 = vector.shape_cast %9 : vector<8xf32> to vector<1x1x8xf32>
    %11 = vector.broadcast %10 : vector<1x1x8xf32> to vector<8x8x8xf32>
    %12 = arith.addf %7, %11 : vector<8x8x8xf32>
    %cst = arith.constant 0.000000e+00 : f32
    %13 = vector.broadcast %cst : f32 to vector<8x8x8xf32>
    %14 = arith.maximumf %12, %13 : vector<8x8x8xf32>
    %cst_7 = arith.constant 0.000000e+00 : f32
    %15 = vector.broadcast %cst_7 : f32 to vector<10x10x8xf32>
    %c0_8 = arith.constant 0 : index
    %c0_9 = arith.constant 0 : index
    %c0_10 = arith.constant 0 : index
    %16 = vector.load %arg8[%c0_8, %c0_9, %c0_10] : memref<10x10x8xf32, #tpu.memory_space<vmem>>, vector<10x10x8xf32>
    tpu.vector_store %arg8[%c0_8, %c0_9, %c0_10], %15 {strides = array<i32>} : memref<10x10x8xf32, #tpu.memory_space<vmem>>, vector<10x10x8xf32>,
    %c1 = arith.constant 1 : index
    %c1_11 = arith.constant 1 : index
    %c0_12 = arith.constant 0 : index
    %17 = vector.load %arg8[%c1, %c1_11, %c0_12] : memref<10x10x8xf32, #tpu.memory_space<vmem>>, vector<8x8x8xf32>
    tpu.vector_store %arg8[%c1, %c1_11, %c0_12], %14 {strides = array<i32>} : memref<10x10x8xf32, #tpu.memory_space<vmem>>, vector<8x8x8xf32>,
    %c0_13 = arith.constant 0 : index
    %c0_14 = arith.constant 0 : index
    %c0_15 = arith.constant 0 : index
    %18 = vector.load %arg8[%c0_13, %c0_14, %c0_15] : memref<10x10x8xf32, #tpu.memory_space<vmem>>, vector<8x8x8xf32>
    %c0_16 = arith.constant 0 : index
    %c1_17 = arith.constant 1 : index
    %c0_18 = arith.constant 0 : index
    %19 = vector.load %arg8[%c0_16, %c1_17, %c0_18] : memref<10x10x8xf32, #tpu.memory_space<vmem>>, vector<8x8x8xf32>
    %c0_19 = arith.constant 0 : index
    %c2 = arith.constant 2 : index
    %c0_20 = arith.constant 0 : index
    %20 = vector.load %arg8[%c0_19, %c2, %c0_20] : memref<10x10x8xf32, #tpu.memory_space<vmem>>, vector<8x8x8xf32>
    %c1_21 = arith.constant 1 : index
    %c0_22 = arith.constant 0 : index
    %c0_23 = arith.constant 0 : index
    %21 = vector.load %arg8[%c1_21, %c0_22, %c0_23] : memref<10x10x8xf32, #tpu.memory_space<vmem>>, vector<8x8x8xf32>
    %c1_24 = arith.constant 1 : index
    %c1_25 = arith.constant 1 : index
    %c0_26 = arith.constant 0 : index
    %22 = vector.load %arg8[%c1_24, %c1_25, %c0_26] : memref<10x10x8xf32, #tpu.memory_space<vmem>>, vector<8x8x8xf32>
    %c1_27 = arith.constant 1 : index
    %c2_28 = arith.constant 2 : index
    %c0_29 = arith.constant 0 : index
    %23 = vector.load %arg8[%c1_27, %c2_28, %c0_29] : memref<10x10x8xf32, #tpu.memory_space<vmem>>, vector<8x8x8xf32>
    %c2_30 = arith.constant 2 : index
    %c0_31 = arith.constant 0 : index
    %c0_32 = arith.constant 0 : index
    %24 = vector.load %arg8[%c2_30, %c0_31, %c0_32] : memref<10x10x8xf32, #tpu.memory_space<vmem>>, vector<8x8x8xf32>
    %c2_33 = arith.constant 2 : index
    %c1_34 = arith.constant 1 : index
    %c0_35 = arith.constant 0 : index
    %25 = vector.load %arg8[%c2_33, %c1_34, %c0_35] : memref<10x10x8xf32, #tpu.memory_space<vmem>>, vector<8x8x8xf32>
    %c2_36 = arith.constant 2 : index
    %c2_37 = arith.constant 2 : index
    %c0_38 = arith.constant 0 : index
    %26 = vector.load %arg8[%c2_36, %c2_37, %c0_38] : memref<10x10x8xf32, #tpu.memory_space<vmem>>, vector<8x8x8xf32>
    %27 = tpu.concatenate %18, %19, %20, %21, %22, %23, %24, %25, %26 in 2 : vector<8x8x8xf32>, vector<8x8x8xf32>, vector<8x8x8xf32>, vector<8x8x8xf32>, vector<8x8x8xf32>, vector<8x8x8xf32>, vector<8x8x8xf32>, vector<8x8x8xf32>, vector<8x8x8xf32> -> vector<8x8x72xf32>
    %28 = arith.truncf %27 : vector<8x8x72xf32> to vector<8x8x72xbf16>
    %c0_39 = arith.constant 0 : index
    %c0_40 = arith.constant 0 : index
    %29 = vector.load %arg4[%c0_39, %c0_40] : memref<72x8xbf16, #tpu.memory_space<vmem>>, vector<72x8xbf16>
    %cst_41 = arith.constant dense<0.000000e+00> : vector<8x8x8xf32>
    %30 = tpu.matmul %28, %29, %cst_41 {dimension_numbers = #tpu.dot_dimension_numbers<[2], [0], [0, 1], [1], [0, 0, 0, 1, 1, 1], [], []>} : vector<8x8x72xbf16>, vector<72x8xbf16>, vector<8x8x8xf32> -> vector<8x8x8xf32>
    %31 = arith.truncf %30 : vector<8x8x8xf32> to vector<8x8x8xbf16>
    %c0_42 = arith.constant 0 : index
    %c0_43 = arith.constant 0 : index
    %c0_44 = arith.constant 0 : index
    %c0_45 = arith.constant 0 : index
    %32 = vector.load %arg5[%c0_42, %c0_43, %c0_44, %c0_45] : memref<1x8x8x8xbf16, #tpu.memory_space<vmem>>, vector<1x8x8x8xbf16>
    %33 = vector.shape_cast %32 : vector<1x8x8x8xbf16> to vector<8x8x8xbf16>
    %34 = vector.shape_cast %31 : vector<8x8x8xbf16> to vector<1x8x8x8xbf16>
    tpu.vector_store %arg5[%c0_42, %c0_43, %c0_44, %c0_45], %34 {strides = array<i32>} : memref<1x8x8x8xbf16, #tpu.memory_space<vmem>>, vector<1x8x8x8xbf16>,
    %35 = arith.extf %31 : vector<8x8x8xbf16> to vector<8x8x8xf32>
    %cst_46 = arith.constant dense<0.000000e+00> : vector<8xf32>
    %36 = vector.multi_reduction <add>, %35, %cst_46 [0, 1] : vector<8x8x8xf32> to vector<8xf32>
    %37 = vector.shape_cast %36 : vector<8xf32> to vector<1x1x8xf32>
    %c0_47 = arith.constant 0 : index
    %c0_48 = arith.constant 0 : index
    %c0_49 = arith.constant 0 : index
    %38 = vector.load %arg6[%c0_47, %c0_48, %c0_49] : memref<1x1x8xf32, #tpu.memory_space<vmem>>, vector<1x1x8xf32>
    tpu.vector_store %arg6[%c0_47, %c0_48, %c0_49], %37 {strides = array<i32>} : memref<1x1x8xf32, #tpu.memory_space<vmem>>, vector<1x1x8xf32>,
    %39 = arith.mulf %35, %35 : vector<8x8x8xf32>
    %cst_50 = arith.constant dense<0.000000e+00> : vector<8xf32>
    %40 = vector.multi_reduction <add>, %39, %cst_50 [0, 1] : vector<8x8x8xf32> to vector<8xf32>
    %41 = vector.shape_cast %40 : vector<8xf32> to vector<1x1x8xf32>
    %c0_51 = arith.constant 0 : index
    %c0_52 = arith.constant 0 : index
    %c0_53 = arith.constant 0 : index
    %42 = vector.load %arg7[%c0_51, %c0_52, %c0_53] : memref<1x1x8xf32, #tpu.memory_space<vmem>>, vector<1x1x8xf32>
    tpu.vector_store %arg7[%c0_51, %c0_52, %c0_53], %41 {strides = array<i32>} : memref<1x1x8xf32, #tpu.memory_space<vmem>>, vector<1x1x8xf32>,
    return
  }
  func.func @transform_0(%arg0: i32) -> (i32, i32, i32, i32) {
    %c0_i32 = arith.constant 0 : i32
    %c0_i32_0 = arith.constant 0 : i32
    %c0_i32_1 = arith.constant 0 : i32
    %c0_i32_2 = arith.constant 0 : i32
    return %arg0, %c0_i32, %c0_i32_0, %c0_i32_1 : i32, i32, i32, i32
  }
  func.func @transform_1(%arg0: i32) -> (i32, i32) {
    %c0_i32 = arith.constant 0 : i32
    %c0_i32_0 = arith.constant 0 : i32
    %c0_i32_1 = arith.constant 0 : i32
    return %c0_i32, %c0_i32_0 : i32, i32
  }
  func.func @transform_2(%arg0: i32) -> (i32, i32) {
    %c0_i32 = arith.constant 0 : i32
    %c0_i32_0 = arith.constant 0 : i32
    %c0_i32_1 = arith.constant 0 : i32
    return %c0_i32, %c0_i32_0 : i32, i32
  }
  func.func @transform_3(%arg0: i32) -> (i32, i32) {
    %c0_i32 = arith.constant 0 : i32
    %c0_i32_0 = arith.constant 0 : i32
    %c0_i32_1 = arith.constant 0 : i32
    return %c0_i32, %c0_i32_0 : i32, i32
  }
  func.func @transform_4(%arg0: i32) -> (i32, i32, i32, i32) {
    %c0_i32 = arith.constant 0 : i32
    %c0_i32_0 = arith.constant 0 : i32
    %c0_i32_1 = arith.constant 0 : i32
    %c0_i32_2 = arith.constant 0 : i32
    return %arg0, %c0_i32, %c0_i32_0, %c0_i32_1 : i32, i32, i32, i32
  }
  func.func @transform_5(%arg0: i32) -> (i32, i32, i32) {
    %c0_i32 = arith.constant 0 : i32
    %c0_i32_0 = arith.constant 0 : i32
    %c0_i32_1 = arith.constant 0 : i32
    return %arg0, %c0_i32, %c0_i32_0 : i32, i32, i32
  }
  func.func @transform_6(%arg0: i32) -> (i32, i32, i32) {
    %c0_i32 = arith.constant 0 : i32
    %c0_i32_0 = arith.constant 0 : i32
    %c0_i32_1 = arith.constant 0 : i32
    return %arg0, %c0_i32, %c0_i32_0 : i32, i32, i32
  }
}

</mosaic_0001>

<bundles_post_ra>
// kernel: down_forward.5
= control target key start
LH: loop header
LB: loop body
LE: loop exit
PB: predicated region body
PF: predicated region fallthrough
CT: control target
= control target key end

     0   :  { %s359_s12 = smov 0   ;;  %s394_s0 = inlined_call_operand.vmem [shape: bf16[2,8,8,8], index: 0, kind: input, shape index: {}]   ;;  %s395_s1 = inlined_call_operand.vmem [shape: f32[1,8], index: 1, kind: input, shape index: {}]   ;;  %s396_s2 = inlined_call_operand.vmem [shape: f32[1,8], index: 2, kind: input, shape index: {}]   ;;  %s397_s3 = inlined_call_operand.vmem [shape: f32[2,8,8,8], index: 3, kind: output, shape index: {}]  }
   0x1 LB: > { %s289_s13 = sadd.s32 4294967295, %s337_s12   ;;  %p293_p0 = scmp.ge.s32.totalorder %s337_s12, 1  ;;  %s337_s12 = sphi %s359_s12, %s13_s12  }
   0x2   : > { %p137_p1 = scmp.lt.s32.totalorder %s337_s12, 3 }
   0x4   : > { %p138_p2 = pnand %p293_p0, %p137_p1 }
   0x5   : > { %p161_p3 = scmp.lt.s32.totalorder (!%p138_p2), %s289_s13, 1 }
   0x6   : > { %141 = sbr.rel (%p138_p2) target bundleno = 27 (0x1b), region = 32 }
   0xb   : > { %s399_s13 = smov (!%p161_p3, %s289_s13), 1  ;;  %v298_v0 = vld [vmem:[%s395_s1] ss:$0 sm:$0xff]  ;;  %vm225_vm0 = vcmask 64512  }
   0xc   : > { %s302_s14 = sshll.u32 %s399_s13, 5  ;;  %v299_v9 = vld [vmem:[%s396_s2] ss:$0 sm:$0xff]  ;;  %s303_s22 = sshll.u32 %s399_s13, 6 }
   0xd   : > { %s165_s17 = scalar_lea.vmem %s394_s0, %s302_s14  ;;  %s170_s25 = scalar_lea.vmem %s397_s3, %s303_s22 }
   0xe   : > { %v305_v1 = vld [vmem:[%s165_s17] sm:$0xff]   ;;  %v320_v2 = vld [vmem:[%s165_s17 + $0x8] sm:$0xff]   ;;  %v321_v3 = vld [vmem:[%s165_s17 + $0x10] sm:$0xff]  }
   0xf   : > { %v306_v4 = vunpack.c.l.bf16 %v305_v1  ;;  %v307_v5 = vunpack.c.h.bf16 %v305_v1  ;;  %v310_v6 = vunpack.c.l.bf16 %v320_v2  ;;  %v311_v7 = vunpack.c.h.bf16 %v320_v2  ;;  %v322_v8 = vld [vmem:[%s165_s17 + $0x18] sm:$0xff]  }
  0x10   : > { %v314_v10 = vunpack.c.l.bf16 %v321_v3  ;;  %v315_v11 = vunpack.c.h.bf16 %v321_v3  ;;  %v318_v12 = vunpack.c.l.bf16 %v322_v8  ;;  %v319_v13 = vunpack.c.h.bf16 %v322_v8 }
  0x11   : > { %v194_v14 = vmul.f32 %v306_v4, %v298_v0  ;;  %v195_v15 = vmul.f32 %v307_v5, %v298_v0  ;;  %v196_v16 = vmul.f32 %v310_v6, %v298_v0  ;;  %v197_v17 = vmul.f32 %v311_v7, %v298_v0 }
  0x12   : > { %v198_v18 = vmul.f32 %v314_v10, %v298_v0  ;;  %v199_v19 = vmul.f32 %v315_v11, %v298_v0  ;;  %v200_v20 = vmul.f32 %v318_v12, %v298_v0  ;;  %v201_v21 = vmul.f32 %v319_v13, %v298_v0 }
  0x13   : > { %v209_v22 = vadd.f32 %v299_v9, %v194_v14  ;;  %v210_v23 = vadd.f32 %v299_v9, %v195_v15  ;;  %v211_v24 = vadd.f32 %v299_v9, %v196_v16  ;;  %v212_v25 = vadd.f32 %v299_v9, %v197_v17 }
  0x14   : > { %v213_v26 = vadd.f32 %v299_v9, %v198_v18  ;;  %v214_v27 = vadd.f32 %v299_v9, %v199_v19  ;;  %v215_v28 = vadd.f32 %v299_v9, %v200_v20  ;;  %v216_v29 = vadd.f32 %v299_v9, %v201_v21 }
  0x15   : > { %v217_v30 = vmax.f32 %v209_v22, 0.0  ;;  %v218_v31 = vmax.f32 %v210_v23, 0.0  ;;  %v219_v32 = vmax.f32 %v211_v24, 0.0  ;;  %v220_v33 = vmax.f32 %v212_v25, 0.0 }
  0x16   : > { %v221_v34 = vmax.f32 %v213_v26, 0.0  ;;  %v222_v35 = vmax.f32 %v214_v27, 0.0  ;;  %v223_v36 = vmax.f32 %v215_v28, 0.0  ;;  %v224_v37 = vmax.f32 %v216_v29, 0.0 }
  0x17   : > { %226 = vst.msk [vmem:[%s170_s25] sm:$0xff] %vm225_vm0, %v217_v30  ;;  %227 = vst.msk [vmem:[%s170_s25 + $0x8] sm:$0xff] %vm225_vm0, %v218_v31 }
  0x18   : > { %228 = vst.msk [vmem:[%s170_s25 + $0x10] sm:$0xff] %vm225_vm0, %v219_v32  ;;  %229 = vst.msk [vmem:[%s170_s25 + $0x18] sm:$0xff] %vm225_vm0, %v220_v33 }
  0x19   : > { %230 = vst.msk [vmem:[%s170_s25 + $0x20] sm:$0xff] %vm225_vm0, %v221_v34  ;;  %231 = vst.msk [vmem:[%s170_s25 + $0x28] sm:$0xff] %vm225_vm0, %v222_v35 }
  0x1a   : > { %232 = vst.msk [vmem:[%s170_s25 + $0x30] sm:$0xff] %vm225_vm0, %v223_v36  ;;  %233 = vst.msk [vmem:[%s170_s25 + $0x38] sm:$0xff] %vm225_vm0, %v224_v37 }
  0x1b PF: > { %s13_s12 = sadd.s32 1, %s337_s12  }
  0x1c   : > { %p10_p4 = scmp.ge.s32.totalorder %s13_s12, 4  }
  0x1e   :  { %12 = sbr.rel (!%p10_p4) target bundleno = 1 (0x1), region = 62 }

// kernel: down_forward.3
= control target key start
LH: loop header
LB: loop body
LE: loop exit
PB: predicated region body
PF: predicated region fallthrough
CT: control target
= control target key end

     0   :  { %s1314_s15 = smov 0   ;;  %s1558_s0 = inlined_call_operand.vmem [shape: f32[2,8,2,8,8], index: 0, kind: input, shape index: {}]   ;;  %s1559_s1 = inlined_call_operand.vmem [shape: bf16[36,8], index: 1, kind: input, shape index: {}]   ;;  %s1560_s2 = inlined_call_operand.vmem [shape: bf16[2,8,8,8], index: 2, kind: output, shape index: {0}]   ;;  %s1561_s3 = inlined_call_operand.vmem [shape: f32[2,1,8], index: 3, kind: output, shape index: {1}]   ;;  %s1562_s4 = inlined_call_operand.vmem [shape: f32[2,1,8], index: 4, kind: output, shape index: {2}]  }
   0x1 LB: > { %s1025_s16 = sadd.s32 4294967295, %s1277_s15   ;;  %p1029_p0 = scmp.ge.s32.totalorder %s1277_s15, 1  ;;  %s1277_s15 = sphi %s1314_s15, %s15_s15  }
   0x2   : > { %p167_p1 = scmp.lt.s32.totalorder %s1277_s15, 3 }
   0x4   : > { %p168_p2 = pnand %p1029_p0, %p167_p1 }
   0x5   : > { %p1322_p3 = scmp.lt.s32.totalorder (!%p168_p2), %s1025_s16, 1  ;;  %s1280_s22 = smov (!%p168_p2), 124  }
   0x6   : > { %171 = sbr.rel (%p168_p2) target bundleno = 554 (0x22a), region = 28  ;;  %s1281_s23 = smov (!%p168_p2), 4  }
   0x7   : > { %s1282_s24 = smov (!%p168_p2), 8   ;;  %s1283_s25 = smov (!%p168_p2), 12  }
   0x8   : > { %s1284_s28 = smov (!%p168_p2), 16   ;;  %s1285_s5 = smov (!%p168_p2), 20  }
   0x9   : > { %s1286_s8 = smov (!%p168_p2), 24   ;;  %s1287_s9 = smov (!%p168_p2), 28  }
   0xa   : > { %s1288_s10 = smov (!%p168_p2), 32  }
   0xb   : > { %vm281_vm0 = vcmask 31744   ;;  %vm283_vm1 = vcmask 25600   ;;  %v1279_v0 = vmov 0.0   ;;  %s1565_s16 = smov (!%p1322_p3, %s1025_s16), 1  ;;  %vm773_vm2 = vcmask 1041408  }
   0xc   : > { %289 = vst.msk [vmem:[#allocation2 + $0x30] sm:$0xff] %vm281_vm0, %v1279_v0  ;;  %282 = vst.msk [vmem:[#allocation2] sm:$0xff] %vm281_vm0, %v1279_v0  ;;  %s1055_s18 = sshll.u32 %s1565_s16, 7  ;;  %v1268_v61 = vld [vmem:[%s1559_s1 + $0x10] ss:$0 sps:$4 sm:$0x33]   ;;  %s211_s19 = scalar_lea.vmem %s1561_s3, %s1565_s16 }
   0xd   : > { %290 = vst.msk [vmem:[#allocation2 + $0x38] sm:$0x3] %vm283_vm1, %v1279_v0  ;;  %284 = vst.msk [vmem:[#allocation2 + $0x8] sm:$0x3] %vm283_vm1, %v1279_v0  ;;  %s203_s21 = scalar_lea.vmem %s1558_s0, %s1055_s18  ;;  %1088 = vmatprep.subr.msk.bf16.mxu0 %vm773_vm2, %v1268_v61  ;;  %v775_v62 = vsel %vm773_vm2, %v1268_v61, 0  ;;  %1089 = vmatprep.subr.msk.bf16.mxu1 %vm773_vm2, %v1268_v61  ;;  %vm649_vm3 = vcmask 64512  }
   0xe   : > { %285 = vst.msk [vmem:[#allocation2 + $0x10] sm:$0xff] %vm281_vm0, %v1279_v0  ;;  %287 = vst.msk [vmem:[#allocation2 + $0x20] sm:$0xff] %vm281_vm0, %v1279_v0  ;;  %v218_v1 = vld [vmem:[%s203_s21 + $0x20] sm:$0xff]  ;;  %v1036_v2 = vld [vmem:[%s203_s21 + $0x28] sm:$0xff]  ;;  %1069 = vmatpush3.bf16.msra.mxu0 %v775_v62  ;;  %1085 = vmatpush3.bf16.msra.mxu1 %v775_v62  ;;  %vm658_vm4 = vcmask 97280   ;;  %vm667_vm5 = vcmask 130048  }
   0xf   : > { %286 = vst.msk [vmem:[#allocation2 + $0x18] sm:$0x3] %vm283_vm1, %v1279_v0  ;;  %288 = vst.msk [vmem:[#allocation2 + $0x28] sm:$0x3] %vm283_vm1, %v1279_v0  ;;  %v216_v3 = vld [vmem:[%s203_s21] sm:$0xff]  ;;  %v235_v4 = vmax.f32 %v218_v1, %v1036_v2  ;;  %v1034_v5 = vld [vmem:[%s203_s21 + $0x8] sm:$0xff] }
  0x10   : > { %291 = vst.msk [vmem:[#allocation2 + $0x40] sm:$0xff] %vm281_vm0, %v1279_v0  ;;  %293 = vst.msk [vmem:[#allocation2 + $0x50] sm:$0xff] %vm281_vm0, %v1279_v0  ;;  %v219_v6 = vld [vmem:[%s203_s21 + $0x30] sm:$0xff]  ;;  %v1037_v7 = vld [vmem:[%s203_s21 + $0x38] sm:$0xff]  ;;  %v233_v8 = vmax.f32 %v216_v3, %v1034_v5  ;;  %vm676_vm6 = vcmask 162816   ;;  %vm685_vm7 = vcmask 195584  }
  0x11   : > { %292 = vst.msk [vmem:[#allocation2 + $0x48] sm:$0x3] %vm283_vm1, %v1279_v0  ;;  %294 = vst.msk [vmem:[#allocation2 + $0x58] sm:$0x3] %vm283_vm1, %v1279_v0  ;;  %v217_v9 = vld [vmem:[%s203_s21 + $0x10] sm:$0xff]  ;;  %v1035_v10 = vld [vmem:[%s203_s21 + $0x18] sm:$0xff]  ;;  %253 = vrot.lane.b32.xlu1 %v235_v4, %s1280_s22  ;;  %v236_v11 = vmax.f32 %v219_v6, %v1037_v7 }
  0x12   : > { %295 = vst.msk [vmem:[#allocation2 + $0x60] sm:$0xff] %vm281_vm0, %v1279_v0  ;;  %297 = vst.msk [vmem:[#allocation2 + $0x70] sm:$0xff] %vm281_vm0, %v1279_v0  ;;  %249 = vrot.lane.b32.xlu0 %v233_v8, %s1280_s22  ;;  %v234_v12 = vmax.f32 %v217_v9, %v1035_v10  ;;  %v221_v13 = vld [vmem:[%s203_s21 + $0x50] sm:$0xff]  ;;  %v1039_v14 = vld [vmem:[%s203_s21 + $0x58] sm:$0xff]  ;;  %vm694_vm8 = vcmask 228352   ;;  %vm703_vm9 = vcmask 261120  }
  0x13   : > { %296 = vst.msk [vmem:[#allocation2 + $0x68] sm:$0x3] %vm283_vm1, %v1279_v0  ;;  %298 = vst.msk [vmem:[#allocation2 + $0x78] sm:$0x3] %vm283_vm1, %v1279_v0  ;;  %v220_v15 = vld [vmem:[%s203_s21 + $0x40] sm:$0xff]  ;;  %v1038_v16 = vld [vmem:[%s203_s21 + $0x48] sm:$0xff]  ;;  %v238_v17 = vmax.f32 %v221_v13, %v1039_v14 }
  0x14   : > { %299 = vst.msk [vmem:[#allocation2 + $0x80] sm:$0xff] %vm281_vm0, %v1279_v0  ;;  %301 = vst.msk [vmem:[#allocation2 + $0x90] sm:$0xff] %vm281_vm0, %v1279_v0  ;;  %v237_v18 = vmax.f32 %v220_v15, %v1038_v16  ;;  %v223_v19 = vld [vmem:[%s203_s21 + $0x70] sm:$0xff]  ;;  %v1041_v20 = vld [vmem:[%s203_s21 + $0x78] sm:$0xff]  ;;  %vm760_vm10 = vcmask 293888   ;;  %s1056_s11 = sshll.u32 %s1565_s16, 5 }
  0x15   : > { %300 = vst.msk [vmem:[#allocation2 + $0x88] sm:$0x3] %vm283_vm1, %v1279_v0  ;;  %302 = vst.msk [vmem:[#allocation2 + $0x98] sm:$0x3] %vm283_vm1, %v1279_v0  ;;  %255 = vrot.lane.b32.xlu1 %v236_v11, %s1280_s22  ;;  %v222_v21 = vld [vmem:[%s203_s21 + $0x60] sm:$0xff]  ;;  %v1040_v22 = vld [vmem:[%s203_s21 + $0x68] sm:$0xff]  ;;  %v240_v23 = vmax.f32 %v223_v19, %v1041_v20  ;;  %s1513_s14 = scalar_lea.vmem %s1560_s2, %s1056_s11 }
  0x16   : > { %251 = vrot.lane.b32.xlu0 %v234_v12, %s1280_s22  ;;  %v239_v24 = vmax.f32 %v222_v21, %v1040_v22  ;;  %v320_v35 = vld [vmem:[#allocation2 + $0x1] sm:$0xff]  ;;  %vm850_vm11 = vcmask 60416   ;;  %vm888_vm12 = vcmask 57344  }
  0x17   : > { %v328_v41 = vld [vmem:[#allocation2 + $0x2] sm:$0xff] }
  0x18   : > { %v1269_v2 = vld [vmem:[%s1559_s1 + $0x8] sm:$0xff]   ;;  %v1270_v6 = vld [vmem:[%s1559_s1] sm:$0xff]  }
  0x19   : > { %259 = vrot.lane.b32.xlu1 %v238_v17, %s1280_s22  ;;  %1070 = vmatprep.subr.bf16.mxu0 %v1269_v2 }
  0x1a   : > { %257 = vrot.lane.b32.xlu0 %v237_v18, %s1280_s22  ;;  %1083 = vmatprep.subr.bf16.mxu1 %v1269_v2 }
  0x1b   : > { %1071 = vmatpush3.bf16.msra.mxu0 %v1269_v2  ;;  %1086 = vmatpush3.bf16.msra.mxu1 %v1269_v2 }
  0x1c   : > { %1072 = vmatprep.subr.bf16.mxu0 %v1270_v6  ;;  %1084 = vmatprep.subr.bf16.mxu1 %v1270_v6 }
  0x1d   : > { %263 = vrot.lane.b32.xlu1 %v240_v23, %s1280_s22 }
  0x1e   : > { %261 = vrot.lane.b32.xlu0 %v239_v24, %s1280_s22  ;;  %s214_s22 = scalar_lea.vmem %s1562_s4, %s1565_s16 }
  0x1f   : > { %1073 = vmatpush3.bf16.msra.mxu0 %v1270_v6  ;;  %1087 = vmatpush3.bf16.msra.mxu1 %v1270_v6 }
  0x83   : > { %v254_v25 = vpop.permute.xlu1 %253 }
  0x84   : > { %v275_v26 = vmax.f32 %v235_v4, %v254_v25  ;;  %v250_v27 = vpop.permute.xlu0 %249 }
  0x85   : > { %v273_v28 = vmax.f32 %v233_v8, %v250_v27 }
  0x86   : > { %306 = vst.msk [vmem:[#allocation2 + $0x31] sm:$0xff] %vm281_vm0, %v275_v26 }
  0x87   : > { %304 = vst.msk [vmem:[#allocation2 + $0x11] sm:$0xff] %vm281_vm0, %v273_v28  ;;  %v256_v29 = vpop.permute.xlu1 %255 }
  0x88   : > { %v276_v30 = vmax.f32 %v236_v11, %v256_v29  ;;  %v252_v31 = vpop.permute.xlu0 %251 }
  0x89   : > { %v274_v32 = vmax.f32 %v234_v12, %v252_v31 }
  0x8a   : > { %307 = vst.msk [vmem:[#allocation2 + $0x41] sm:$0xff] %vm281_vm0, %v276_v30  ;;  %v368_v30 = vld [vmem:[#allocation2 + $0x90] sm:$0xff] }
  0x8b   : > { %305 = vst.msk [vmem:[#allocation2 + $0x21] sm:$0xff] %vm281_vm0, %v274_v32  ;;  %v260_v33 = vpop.permute.xlu1 %259  ;;  %v376_v32 = vld [vmem:[#allocation2 + $0x91] sm:$0xff] }
  0x8c   : > { %v258_v34 = vpop.permute.xlu0 %257  ;;  %v278_v36 = vmax.f32 %v238_v17, %v260_v33 }
  0x8d   : > { %v277_v37 = vmax.f32 %v237_v18, %v258_v34  ;;  %v323_v43 = vld [vmem:[#allocation2 + $0x31] sm:$0xff] }
  0x8e   : > { %v321_v38 = vld [vmem:[#allocation2 + $0x11] sm:$0xff]  ;;  %309 = vst.msk [vmem:[#allocation2 + $0x61] sm:$0xff] %vm281_vm0, %v278_v36 }
  0x8f   : > { %308 = vst.msk [vmem:[#allocation2 + $0x51] sm:$0xff] %vm281_vm0, %v277_v37  ;;  %v1108_v39 = vpack.i.bf16 %v321_v38, %v320_v35  ;;  %v264_v40 = vpop.permute.xlu1 %263  ;;  %v329_v42 = vld [vmem:[#allocation2 + $0x12] sm:$0xff] }
  0x90   : > { %v280_v44 = vmax.f32 %v240_v23, %v264_v40  ;;  %v262_v45 = vpop.permute.xlu0 %261  ;;  %v1118_v48 = vpack.i.bf16 %v329_v42, %v328_v41  ;;  %v331_v52 = vld [vmem:[#allocation2 + $0x32] sm:$0xff] }
  0x91   : > { %1109 = vrot.lane.b32.xlu0 %v1108_v39, %s1281_s23  ;;  %v279_v46 = vmax.f32 %v239_v24, %v262_v45  ;;  %v1367_v53 = vld [vmem:[#allocation2 + $0x10] sm:$0xff]  ;;  %v1373_v57 = vld [vmem:[#allocation2 + $0x40] sm:$0xff] }
  0x92   : > { %v322_v47 = vld [vmem:[#allocation2 + $0x21] sm:$0xff]  ;;  %311 = vst.msk [vmem:[#allocation2 + $0x81] sm:$0xff] %vm281_vm0, %v280_v44  ;;  %v1371_v56 = vld [vmem:[#allocation2 + $0x30] sm:$0xff] }
  0x93   : > { %v1113_v49 = vpack.i.bf16 %v323_v43, %v322_v47  ;;  %310 = vst.msk [vmem:[#allocation2 + $0x71] sm:$0xff] %vm281_vm0, %v279_v46  ;;  %v1363_v50 = vld [vmem:[#allocation2 + $0x20] sm:$0xff]  ;;  %v1138_v58 = vpack.i.bf16 %v322_v47, %v321_v38  ;;  %v1133_v59 = vpack.i.bf16 %v1373_v57, %v1371_v56  ;;  %v384_v34 = vld [vmem:[#allocation2 + $0x92] sm:$0xff] }
  0x94   : > { %v330_v51 = vld [vmem:[#allocation2 + $0x22] sm:$0xff]  ;;  %v1128_v54 = vpack.i.bf16 %v1363_v50, %v1367_v53  ;;  %v1158_v3 = vpack.i.bf16 %v1371_v56, %v1363_v50 }
  0x95   : > { %1119 = vrot.lane.b32.xlu0 %v1118_v48, %s1282_s24  ;;  %1114 = vrot.lane.b32.xlu1 %v1113_v49, %s1281_s23  ;;  %v1123_v55 = vpack.i.bf16 %v331_v52, %v330_v51  ;;  %v347_v60 = vld [vmem:[#allocation2 + $0x41] sm:$0xff]  ;;  %v1148_v63 = vpack.i.bf16 %v330_v51, %v329_v42 }
  0x96   : > { %v1143_v0 = vpack.i.bf16 %v347_v60, %v323_v43  ;;  %v355_v1 = vld [vmem:[#allocation2 + $0x42] sm:$0xff]  ;;  %v1391_v5 = vld [vmem:[#allocation2 + $0x50] sm:$0xff] }
  0x97   : > { %v1153_v4 = vpack.i.bf16 %v355_v1, %v331_v52  ;;  %v1163_v7 = vpack.i.bf16 %v1391_v5, %v1373_v57  ;;  %v372_v8 = vld [vmem:[#allocation2 + $0x51] sm:$0xff]  ;;  %v326_v13 = vld [vmem:[#allocation2 + $0x61] sm:$0xff] }
  0x98   : > { %v1173_v9 = vpack.i.bf16 %v372_v8, %v347_v60  ;;  %v380_v10 = vld [vmem:[#allocation2 + $0x52] sm:$0xff]  ;;  %v1406_v15 = vld [vmem:[#allocation2 + $0x60] sm:$0xff]  ;;  %v1218_v22 = vpack.i.bf16 %v326_v13, %v372_v8 }
  0x99   : > { %1129 = vrot.lane.b32.xlu0 %v1128_v54, %s1283_s25  ;;  %1124 = vrot.lane.b32.xlu1 %v1123_v55, %s1282_s24  ;;  %v1188_v12 = vpack.i.bf16 %v380_v10, %v355_v1  ;;  %v334_v17 = vld [vmem:[#allocation2 + $0x62] sm:$0xff]  ;;  %v1208_v18 = vpack.i.bf16 %v1406_v15, %v1391_v5 }
  0x9a   : > { %v327_v11 = vld [vmem:[#allocation2 + $0x71] sm:$0xff]  ;;  %v343_v21 = vld [vmem:[#allocation2 + $0x80] sm:$0xff]  ;;  %v1228_v25 = vpack.i.bf16 %v334_v17, %v380_v10 }
  0x9b   : > { %v1193_v14 = vpack.i.bf16 %v327_v11, %v326_v13  ;;  %v335_v16 = vld [vmem:[#allocation2 + $0x72] sm:$0xff]  ;;  %v351_v24 = vld [vmem:[#allocation2 + $0x81] sm:$0xff]  ;;  %v1243_v31 = vpack.i.bf16 %v368_v30, %v343_v21 }
  0x9c   : > { %v1203_v19 = vpack.i.bf16 %v335_v16, %v334_v17  ;;  %v1412_v20 = vld [vmem:[#allocation2 + $0x70] sm:$0xff]  ;;  %v1223_v26 = vpack.i.bf16 %v351_v24, %v327_v11  ;;  %v359_v27 = vld [vmem:[#allocation2 + $0x82] sm:$0xff]  ;;  %v1253_v33 = vpack.i.bf16 %v376_v32, %v351_v24 }
  0x9d   : > { %1139 = vrot.lane.b32.xlu0 %v1138_v58, %s1284_s28  ;;  %1134 = vrot.lane.b32.xlu1 %v1133_v59, %s1283_s25  ;;  %v1213_v23 = vpack.i.bf16 %v343_v21, %v1412_v20  ;;  %v1238_v28 = vpack.i.bf16 %v1412_v20, %v1406_v15  ;;  %v1233_v29 = vpack.i.bf16 %v359_v27, %v335_v16  ;;  %v312_v47 = vld [vmem:[#allocation2] sm:$0xff] }
  0x9e   : > { %v1263_v35 = vpack.i.bf16 %v384_v34, %v359_v27 }
  0xa1   : > { %1149 = vrot.lane.b32.xlu0 %v1148_v63, %s1285_s5  ;;  %1144 = vrot.lane.b32.xlu1 %v1143_v0, %s1284_s28 }
  0xa5   : > { %1159 = vrot.lane.b32.xlu0 %v1158_v3, %s1286_s8  ;;  %1154 = vrot.lane.b32.xlu1 %v1153_v4, %s1285_s5 }
  0xa9   : > { %1169 = vrot.lane.b32.xlu0 %v1113_v49, %s1287_s9  ;;  %1164 = vrot.lane.b32.xlu1 %v1163_v7, %s1286_s8 }
  0xad   : > { %1179 = vrot.lane.b32.xlu0 %v1123_v55, %s1288_s10  ;;  %1174 = vrot.lane.b32.xlu1 %v1173_v9, %s1287_s9 }
  0xb1   : > { %1189 = vrot.lane.b32.xlu0 %v1188_v12, %s1288_s10  ;;  %1184 = vrot.lane.b32.xlu1 %v1173_v9, %s1281_s23 }
  0xb5   : > { %1199 = vrot.lane.b32.xlu0 %v1188_v12, %s1282_s24  ;;  %1194 = vrot.lane.b32.xlu1 %v1193_v14, %s1281_s23 }
  0xb9   : > { %1209 = vrot.lane.b32.xlu0 %v1208_v18, %s1283_s25  ;;  %1204 = vrot.lane.b32.xlu1 %v1203_v19, %s1282_s24 }
  0xbd   : > { %1219 = vrot.lane.b32.xlu0 %v1218_v22, %s1284_s28  ;;  %1214 = vrot.lane.b32.xlu1 %v1213_v23, %s1283_s25 }
  0xc1   : > { %1229 = vrot.lane.b32.xlu0 %v1228_v25, %s1285_s5  ;;  %1224 = vrot.lane.b32.xlu1 %v1223_v26, %s1284_s28 }
  0xc5   : > { %1239 = vrot.lane.b32.xlu0 %v1238_v28, %s1286_s8  ;;  %1234 = vrot.lane.b32.xlu1 %v1233_v29, %s1285_s5 }
  0xc9   : > { %1249 = vrot.lane.b32.xlu0 %v1193_v14, %s1287_s9  ;;  %1244 = vrot.lane.b32.xlu1 %v1243_v31, %s1286_s8 }
  0xcd   : > { %1259 = vrot.lane.b32.xlu0 %v1203_v19, %s1288_s10  ;;  %1254 = vrot.lane.b32.xlu1 %v1253_v33, %s1287_s9 }
  0xd1   : > { %1264 = vrot.lane.b32.xlu1 %v1263_v35, %s1288_s10 }
 0x103   : > { %v1110_v36 = vpop.permute.xlu0 %1109 }
 0x104   : > { %v1112_v43 = vunpack.i.h.bf16 %v1110_v36  ;;  %v1111_v44 = vunpack.i.l.bf16 %v1110_v36 }
 0x106   : > { %v642_v54 = vsel %vm281_vm0, %v1367_v53, %v1112_v43  ;;  %v641_v55 = vsel %vm281_vm0, %v312_v47, %v1111_v44 }
 0x107   : > { %v1115_v37 = vpop.permute.xlu1 %1114  ;;  %v1120_v38 = vpop.permute.xlu0 %1119 }
 0x108   : > { %v1117_v48 = vunpack.i.h.bf16 %v1115_v37  ;;  %v1116_v49 = vunpack.i.l.bf16 %v1115_v37  ;;  %v1122_v51 = vunpack.i.h.bf16 %v1120_v38  ;;  %v1121_v52 = vunpack.i.l.bf16 %v1120_v38 }
 0x10a   : > { %v644_v2 = vsel %vm281_vm0, %v1371_v56, %v1117_v48  ;;  %v643_v3 = vsel %vm281_vm0, %v1363_v50, %v1116_v49  ;;  %v650_v53 = vsel %vm649_vm3, %v641_v55, %v1121_v52  ;;  %v651_v7 = vsel %vm649_vm3, %v642_v54, %v1122_v51 }
 0x10b   : > { %v1125_v39 = vpop.permute.xlu1 %1124  ;;  %v1130_v40 = vpop.permute.xlu0 %1129 }
 0x10c   : > { %v1127_v58 = vunpack.i.h.bf16 %v1125_v39  ;;  %v1126_v59 = vunpack.i.l.bf16 %v1125_v39  ;;  %v1132_v62 = vunpack.i.h.bf16 %v1130_v40  ;;  %v1131_v63 = vunpack.i.l.bf16 %v1130_v40 }
 0x10e   : > { %v652_v10 = vsel %vm649_vm3, %v643_v3, %v1126_v59  ;;  %v653_v11 = vsel %vm649_vm3, %v644_v2, %v1127_v58  ;;  %v659_v16 = vsel %vm658_vm4, %v650_v53, %v1131_v63  ;;  %v660_v50 = vsel %vm658_vm4, %v651_v7, %v1132_v62 }
 0x10f   : > { %v1135_v41 = vpop.permute.xlu1 %1134  ;;  %v1140_v42 = vpop.permute.xlu0 %1139 }
 0x110   : > { %v1137_v0 = vunpack.i.h.bf16 %v1135_v41  ;;  %v1136_v1 = vunpack.i.l.bf16 %v1135_v41  ;;  %v1142_v4 = vunpack.i.h.bf16 %v1140_v42  ;;  %v1141_v6 = vunpack.i.l.bf16 %v1140_v42 }
 0x112   : > { %v661_v17 = vsel %vm658_vm4, %v652_v10, %v1136_v1  ;;  %v662_v18 = vsel %vm658_vm4, %v653_v11, %v1137_v0  ;;  %v668_v19 = vsel %vm667_vm5, %v659_v16, %v1141_v6  ;;  %v669_v21 = vsel %vm667_vm5, %v660_v50, %v1142_v4 }
 0x113   : > { %v1430_v45 = vpop.permute.xlu1 %1144  ;;  %v1150_v46 = vpop.permute.xlu0 %1149 }
 0x114   : > { %v1152_v8 = vunpack.i.h.bf16 %v1150_v46  ;;  %v1151_v9 = vunpack.i.l.bf16 %v1150_v46  ;;  %v1147_v24 = vunpack.i.h.bf16 %v1430_v45  ;;  %v1146_v25 = vunpack.i.l.bf16 %v1430_v45 }
 0x116   : > { %v677_v26 = vsel %vm676_vm6, %v668_v19, %v1151_v9  ;;  %v678_v27 = vsel %vm676_vm6, %v669_v21, %v1152_v8  ;;  %v670_v42 = vsel %vm667_vm5, %v661_v17, %v1146_v25  ;;  %v671_v43 = vsel %vm667_vm5, %v662_v18, %v1147_v24 }
 0x117   : > { %v1155_v60 = vpop.permute.xlu1 %1154  ;;  %v1160_v61 = vpop.permute.xlu0 %1159 }
 0x118   : > { %v1162_v12 = vunpack.i.h.bf16 %v1160_v61  ;;  %v1161_v13 = vunpack.i.l.bf16 %v1160_v61  ;;  %v1157_v28 = vunpack.i.h.bf16 %v1155_v60  ;;  %v1156_v29 = vunpack.i.l.bf16 %v1155_v60 }
 0x11a   : > { %v686_v30 = vsel %vm685_vm7, %v677_v26, %v1161_v13  ;;  %v687_v31 = vsel %vm685_vm7, %v678_v27, %v1162_v12  ;;  %v679_v46 = vsel %vm676_vm6, %v670_v42, %v1156_v29  ;;  %v680_v47 = vsel %vm676_vm6, %v671_v43, %v1157_v28 }
 0x11b   : > { %v1165_v14 = vpop.permute.xlu1 %1164  ;;  %v1170_v56 = vpop.permute.xlu0 %1169 }
 0x11c   : > { %v1172_v22 = vunpack.i.h.bf16 %v1170_v56  ;;  %v1171_v23 = vunpack.i.l.bf16 %v1170_v56  ;;  %v1167_v34 = vunpack.i.h.bf16 %v1165_v14  ;;  %v1166_v35 = vunpack.i.l.bf16 %v1165_v14 }
 0x11e   : > { %v695_v40 = vsel %vm694_vm8, %v686_v30, %v1171_v23  ;;  %v696_v41 = vsel %vm694_vm8, %v687_v31, %v1172_v22  ;;  %v689_v52 = vsel %vm685_vm7, %v680_v47, %v1167_v34  ;;  %v688_v54 = vsel %vm685_vm7, %v679_v46, %v1166_v35 }
 0x11f   : > { %v1175_v32 = vpop.permute.xlu1 %1174  ;;  %v1180_v33 = vpop.permute.xlu0 %1179 }
 0x120   : > { %v1182_v36 = vunpack.i.h.bf16 %v1180_v33  ;;  %v1181_v37 = vunpack.i.l.bf16 %v1180_v33  ;;  %v1177_v38 = vunpack.i.h.bf16 %v1175_v32  ;;  %v1176_v39 = vunpack.i.l.bf16 %v1175_v32 }
 0x122   : > { %v704_v44 = vsel %vm703_vm9, %v695_v40, %v1181_v37  ;;  %v705_v45 = vsel %vm703_vm9, %v696_v41, %v1182_v36  ;;  %v697_v59 = vsel %vm694_vm8, %v688_v54, %v1176_v39  ;;  %v698_v60 = vsel %vm694_vm8, %v689_v52, %v1177_v38 }
 0x123   : > { %v1185_v48 = vpop.permute.xlu1 %1184  ;;  %v1190_v49 = vpop.permute.xlu0 %1189  ;;  %v1057_v51 = vpack.c.bf16 %v705_v45, %v704_v44 }
 0x124   : > { %v1192_v55 = vunpack.i.h.bf16 %v1190_v49  ;;  %v1191_v58 = vunpack.i.l.bf16 %v1190_v49  ;;  %v1187_v53 = vunpack.i.h.bf16 %v1185_v48  ;;  %v1186_v7 = vunpack.i.l.bf16 %v1185_v48 }
 0x125   : > { %1074 = vmatprep.mubr.msk.bf16.mxu0 %vm760_vm10, %v1057_v51 }
 0x126   : > { %v707_v61 = vsel %vm703_vm9, %v698_v60, %v1192_v55  ;;  %v706_v62 = vsel %vm703_vm9, %v697_v59, %v1191_v58  ;;  %v645_v14 = vsel %vm281_vm0, %v1373_v57, %v1186_v7  ;;  %v646_v56 = vsel %vm281_vm0, %v1391_v5, %v1187_v53 }
 0x127   : > { %v1058_v63 = vpack.c.bf16 %v707_v61, %v706_v62  ;;  %v1195_v0 = vpop.permute.xlu1 %1194  ;;  %v1200_v1 = vpop.permute.xlu0 %1199 }
 0x128   : > { %v1197_v10 = vunpack.i.h.bf16 %v1195_v0  ;;  %v1196_v11 = vunpack.i.l.bf16 %v1195_v0  ;;  %v1202_v12 = vunpack.i.h.bf16 %v1200_v1  ;;  %v1201_v13 = vunpack.i.l.bf16 %v1200_v1 }
 0x129   : > { %1075 = vmatmul.mubr.msk.bf16.vlgmr.msra.gmra.mxu0 %vm760_vm10, %v1058_v63 }
 0x12a   : > { %v647_v24 = vsel %vm281_vm0, %v1406_v15, %v1196_v11  ;;  %v648_v25 = vsel %vm281_vm0, %v1412_v20, %v1197_v10  ;;  %v655_v57 = vsel %vm649_vm3, %v646_v56, %v1202_v12  ;;  %v654_v5 = vsel %vm649_vm3, %v645_v14, %v1201_v13 }
 0x12b   : > { %v1205_v2 = vpop.permute.xlu1 %1204  ;;  %v1210_v3 = vpop.permute.xlu0 %1209 }
 0x12c   : > { %v1207_v16 = vunpack.i.h.bf16 %v1205_v2  ;;  %v1206_v50 = vunpack.i.l.bf16 %v1205_v2  ;;  %v1212_v19 = vunpack.i.h.bf16 %v1210_v3  ;;  %v1211_v21 = vunpack.i.l.bf16 %v1210_v3 }
 0x12e   : > { %v656_v30 = vsel %vm649_vm3, %v647_v24, %v1206_v50  ;;  %v657_v31 = vsel %vm649_vm3, %v648_v25, %v1207_v16  ;;  %v663_v15 = vsel %vm658_vm4, %v654_v5, %v1211_v21  ;;  %v664_v20 = vsel %vm658_vm4, %v655_v57, %v1212_v19 }
 0x12f   : > { %v1215_v4 = vpop.permute.xlu1 %1214  ;;  %v1220_v6 = vpop.permute.xlu0 %1219 }
 0x130   : > { %v1217_v22 = vunpack.i.h.bf16 %v1215_v4  ;;  %v1216_v23 = vunpack.i.l.bf16 %v1215_v4  ;;  %v1222_v26 = vunpack.i.h.bf16 %v1220_v6  ;;  %v1221_v27 = vunpack.i.l.bf16 %v1220_v6 }
 0x132   : > { %v665_v36 = vsel %vm658_vm4, %v656_v30, %v1216_v23  ;;  %v666_v37 = vsel %vm658_vm4, %v657_v31, %v1217_v22  ;;  %v672_v38 = vsel %vm667_vm5, %v663_v15, %v1221_v27  ;;  %v673_v39 = vsel %vm667_vm5, %v664_v20, %v1222_v26 }
 0x133   : > { %v1225_v8 = vpop.permute.xlu1 %1224  ;;  %v1230_v9 = vpop.permute.xlu0 %1229 }
 0x134   : > { %v1232_v28 = vunpack.i.h.bf16 %v1230_v9  ;;  %v1231_v29 = vunpack.i.l.bf16 %v1230_v9  ;;  %v1227_v42 = vunpack.i.h.bf16 %v1225_v8  ;;  %v1226_v43 = vunpack.i.l.bf16 %v1225_v8 }
 0x136   : > { %v681_v44 = vsel %vm676_vm6, %v672_v38, %v1231_v29  ;;  %v682_v45 = vsel %vm676_vm6, %v673_v39, %v1232_v28  ;;  %v674_v0 = vsel %vm667_vm5, %v665_v36, %v1226_v43  ;;  %v675_v1 = vsel %vm667_vm5, %v666_v37, %v1227_v42 }
 0x137   : > { %v1235_v17 = vpop.permute.xlu1 %1234  ;;  %v1240_v18 = vpop.permute.xlu0 %1239 }
 0x138   : > { %v1242_v32 = vunpack.i.h.bf16 %v1240_v18  ;;  %v1241_v33 = vunpack.i.l.bf16 %v1240_v18  ;;  %v1237_v46 = vunpack.i.h.bf16 %v1235_v17  ;;  %v1236_v47 = vunpack.i.l.bf16 %v1235_v17 }
 0x13a   : > { %v690_v48 = vsel %vm685_vm7, %v681_v44, %v1241_v33  ;;  %v691_v49 = vsel %vm685_vm7, %v682_v45, %v1242_v32  ;;  %v683_v4 = vsel %vm676_vm6, %v674_v0, %v1236_v47  ;;  %v684_v6 = vsel %vm676_vm6, %v675_v1, %v1237_v46 }
 0x13b   : > { %v1245_v34 = vpop.permute.xlu1 %1244  ;;  %v1250_v35 = vpop.permute.xlu0 %1249 }
 0x13c   : > { %v1252_v40 = vunpack.i.h.bf16 %v1250_v35  ;;  %v1251_v41 = vunpack.i.l.bf16 %v1250_v35  ;;  %v1247_v54 = vunpack.i.h.bf16 %v1245_v34  ;;  %v1246_v55 = vunpack.i.l.bf16 %v1245_v34 }
 0x13e   : > { %v699_v62 = vsel %vm694_vm8, %v690_v48, %v1251_v41  ;;  %v700_v63 = vsel %vm694_vm8, %v691_v49, %v1252_v40  ;;  %v692_v8 = vsel %vm685_vm7, %v683_v4, %v1246_v55  ;;  %v693_v9 = vsel %vm685_vm7, %v684_v6, %v1247_v54 }
 0x13f   : > { %v1255_v51 = vpop.permute.xlu1 %1254  ;;  %v1260_v52 = vpop.permute.xlu0 %1259 }
 0x140   : > { %v1262_v58 = vunpack.i.h.bf16 %v1260_v52  ;;  %v1261_v59 = vunpack.i.l.bf16 %v1260_v52  ;;  %v1257_v60 = vunpack.i.h.bf16 %v1255_v51  ;;  %v1256_v61 = vunpack.i.l.bf16 %v1255_v51 }
 0x142   : > { %v708_v2 = vsel %vm703_vm9, %v699_v62, %v1261_v59  ;;  %v709_v3 = vsel %vm703_vm9, %v700_v63, %v1262_v58  ;;  %v701_v12 = vsel %vm694_vm8, %v692_v8, %v1256_v61  ;;  %v702_v13 = vsel %vm694_vm8, %v693_v9, %v1257_v60 }
 0x143   : > { %v1265_v53 = vpop.permute.xlu1 %1264  ;;  %v1059_v7 = vpack.c.bf16 %v709_v3, %v708_v2 }
 0x144   : > { %v1267_v10 = vunpack.i.h.bf16 %v1265_v53  ;;  %v1266_v11 = vunpack.i.l.bf16 %v1265_v53 }
 0x145   : > { %1078 = vmatprep.mubr.msk.bf16.mxu1 %vm760_vm10, %v1059_v7 }
 0x146   : > { %v710_v14 = vsel %vm703_vm9, %v701_v12, %v1266_v11  ;;  %v711_v56 = vsel %vm703_vm9, %v702_v13, %v1267_v10 }
 0x147   : > { %v1060_v16 = vpack.c.bf16 %v711_v56, %v710_v14 }
 0x149   : > { %1079 = vmatmul.mubr.msk.bf16.vlgmr.msra.gmra.mxu1 %vm760_vm10, %v1060_v16 }
 0x1e9   : > { %v1076_v50 = vpop.f32.mrf.mxu0 }
 0x1ea   : > { %v844_v17 = vpack.c.bf16 %v1076_v50, %v1076_v50 }
 0x1eb   : > { %v811_v18 = vpop.f32.mrf.mxu0 }
 0x1ec   : > { %853 = vst.msk [vmem:[%s1513_s14 + $0x8] sm:$0xf] %vm850_vm11, %v844_v17  ;;  %v842_v19 = vpack.c.bf16 %v811_v18, %v811_v18  ;;  %v861_v57 = vunpack.c.l.bf16 %v844_v17 }
 0x1ed   : > { %v1077_v21 = vpop.f32.mrf.mxu0 }
 0x1ee   : > { %851 = vst.msk [vmem:[%s1513_s14] sm:$0xf] %vm850_vm11, %v842_v19  ;;  %v845_v22 = vpack.c.bf16 %v1077_v21, %v1077_v21  ;;  %v859_v26 = vunpack.c.l.bf16 %v842_v19  ;;  %v892_v34 = vmul.f32 %v861_v57, %v861_v57  ;;  %v870_v38 = vsel %vm649_vm3, %v861_v57, 0.0 }
 0x1ef   : > { %v814_v23 = vpop.f32.mrf.mxu0 }
 0x1f0   : > { %854 = vst.msk [vmem:[%s1513_s14 + $0xc] sm:$0xf] %vm850_vm11, %v845_v22  ;;  %v843_v24 = vpack.c.bf16 %v814_v23, %v814_v23  ;;  %v890_v5 = vmul.f32 %v859_v26, %v859_v26  ;;  %v867_v29 = vsel %vm649_vm3, %v859_v26, 0.0  ;;  %v862_v15 = vunpack.c.l.bf16 %v845_v22 }
 0x1f1   : > { %v901_v43 = vsel %vm649_vm3, %v892_v34, 0.0 }
 0x1f2   : > { %852 = vst.msk [vmem:[%s1513_s14 + $0x4] sm:$0xf] %vm850_vm11, %v843_v24  ;;  %v860_v25 = vunpack.c.l.bf16 %v843_v24  ;;  %v898_v35 = vsel %vm649_vm3, %v890_v5, 0.0  ;;  %v893_v44 = vmul.f32 %v862_v15, %v862_v15  ;;  %v872_v48 = vsel %vm649_vm3, %v862_v15, 0.0 }
 0x1f4   : > { %v891_v27 = vmul.f32 %v860_v25, %v860_v25  ;;  %v868_v28 = vsel %vm649_vm3, %v860_v25, 0.0  ;;  %v903_v55 = vsel %vm649_vm3, %v893_v44, 0.0 }
 0x1f5   : > { %v869_v32 = vadd.f32 %v868_v28, %v867_v29 }
 0x1f6   : > { %v899_v30 = vsel %vm649_vm3, %v891_v27, 0.0 }
 0x1f7   : > { %v900_v36 = vadd.f32 %v899_v30, %v898_v35  ;;  %v871_v40 = vadd.f32 %v870_v38, %v869_v32 }
 0x1f9   : > { %v902_v46 = vadd.f32 %v901_v43, %v900_v36  ;;  %v873_v54 = vadd.f32 %v872_v48, %v871_v40 }
 0x1fb   : > { %v904_v62 = vadd.f32 %v903_v55, %v902_v46 }
 0x209   : > { %v1080_v31 = vpop.f32.mrf.mxu1 }
 0x20a   : > { %v848_v33 = vpack.c.bf16 %v1080_v31, %v1080_v31 }
 0x20b   : > { %v827_v20 = vpop.f32.mrf.mxu1 }
 0x20c   : > { %857 = vst.msk [vmem:[%s1513_s14 + $0x18] sm:$0xf] %vm850_vm11, %v848_v33  ;;  %v846_v37 = vpack.c.bf16 %v827_v20, %v827_v20  ;;  %v865_v49 = vunpack.c.l.bf16 %v848_v33 }
 0x20d   : > { %v1081_v39 = vpop.f32.mrf.mxu1 }
 0x20e   : > { %855 = vst.msk [vmem:[%s1513_s14 + $0x10] sm:$0xf] %vm850_vm11, %v846_v37  ;;  %v863_v41 = vunpack.c.l.bf16 %v846_v37  ;;  %v849_v42 = vpack.c.bf16 %v1081_v39, %v1081_v39  ;;  %v896_v63 = vmul.f32 %v865_v49, %v865_v49  ;;  %v878_v4 = vsel %vm649_vm3, %v865_v49, 0.0 }
 0x20f   : > { %v830_v45 = vpop.f32.mrf.mxu1 }
 0x210   : > { %v894_v47 = vmul.f32 %v863_v41, %v863_v41  ;;  %858 = vst.msk [vmem:[%s1513_s14 + $0x1c] sm:$0xf] %vm850_vm11, %v849_v42  ;;  %v874_v51 = vsel %vm649_vm3, %v863_v41, 0.0  ;;  %v847_v52 = vpack.c.bf16 %v830_v45, %v830_v45  ;;  %v866_v59 = vunpack.c.l.bf16 %v849_v42 }
 0x211   : > { %v875_v61 = vadd.f32 %v874_v51, %v873_v54  ;;  %v909_v9 = vsel %vm649_vm3, %v896_v63, 0.0 }
 0x212   : > { %v905_v58 = vsel %vm649_vm3, %v894_v47, 0.0  ;;  %856 = vst.msk [vmem:[%s1513_s14 + $0x14] sm:$0xf] %vm850_vm11, %v847_v52  ;;  %v864_v60 = vunpack.c.l.bf16 %v847_v52  ;;  %v897_v6 = vmul.f32 %v866_v59, %v866_v59  ;;  %v880_v10 = vsel %vm649_vm3, %v866_v59, 0.0 }
 0x213   : > { %v906_v2 = vadd.f32 %v905_v58, %v904_v62 }
 0x214   : > { %v876_v0 = vsel %vm649_vm3, %v864_v60, 0.0  ;;  %v895_v1 = vmul.f32 %v864_v60, %v864_v60  ;;  %v911_v13 = vsel %vm649_vm3, %v897_v6, 0.0 }
 0x215   : > { %v877_v3 = vadd.f32 %v876_v0, %v875_v61 }
 0x216   : > { %v907_v53 = vsel %vm649_vm3, %v895_v1, 0.0 }
 0x217   : > { %v879_v7 = vadd.f32 %v878_v4, %v877_v3  ;;  %v908_v8 = vadd.f32 %v907_v53, %v906_v2 }
 0x219   : > { %v881_v11 = vadd.f32 %v880_v10, %v879_v7  ;;  %v910_v12 = vadd.f32 %v909_v9, %v908_v8 }
 0x21b   : > { %v882_v14 = vrot.slane %v881_v11, 4  ;;  %v912_v56 = vadd.f32 %v911_v13, %v910_v12 }
 0x21d   : > { %v883_v16 = vadd.f32 %v882_v14, %v881_v11  ;;  %v913_v50 = vrot.slane %v912_v56, 4 }
 0x21f   : > { %v884_v17 = vrot.slane %v883_v16, 2  ;;  %v914_v18 = vadd.f32 %v913_v50, %v912_v56 }
 0x221   : > { %v885_v19 = vadd.f32 %v884_v17, %v883_v16  ;;  %v915_v21 = vrot.slane %v914_v18, 2 }
 0x223   : > { %v886_v22 = vrot.slane %v885_v19, 1  ;;  %v916_v23 = vadd.f32 %v915_v21, %v914_v18 }
 0x225   : > { %v887_v24 = vadd.f32 %v886_v22, %v885_v19  ;;  %v917_v25 = vrot.slane %v916_v23, 1 }
 0x227   : > { %889 = vst.msk [vmem:[%s211_s19] sm:$0x1] %vm888_vm12, %v887_v24  ;;  %v918_v26 = vadd.f32 %v917_v25, %v916_v23 }
 0x229   : > { %919 = vst.msk [vmem:[%s214_s22] sm:$0x1] %vm888_vm12, %v918_v26 }
 0x22a PF: > { %s15_s15 = sadd.s32 1, %s1277_s15  }
 0x22b   : > { %p12_p4 = scmp.ge.s32.totalorder %s15_s15, 4  }
 0x22d   :  { %14 = sbr.rel (!%p12_p4) target bundleno = 1 (0x1), region = 85 }

// kernel: down_forward.4
= control target key start
LH: loop header
LB: loop body
LE: loop exit
PB: predicated region body
PF: predicated region fallthrough
CT: control target
= control target key end

     0   :  { %s1408_s21 = smov 0   ;;  %s1669_s0 = inlined_call_operand.vmem [shape: bf16[2,8,8,8], index: 0, kind: input, shape index: {}]   ;;  %s1670_s1 = inlined_call_operand.vmem [shape: f32[1,8], index: 1, kind: input, shape index: {}]   ;;  %s1671_s2 = inlined_call_operand.vmem [shape: f32[1,8], index: 2, kind: input, shape index: {}]   ;;  %s1672_s3 = inlined_call_operand.vmem [shape: bf16[72,8], index: 3, kind: input, shape index: {}]   ;;  %s1673_s4 = inlined_call_operand.vmem [shape: bf16[2,8,8,8], index: 4, kind: output, shape index: {0}]   ;;  %s1674_s5 = inlined_call_operand.vmem [shape: f32[2,1,8], index: 5, kind: output, shape index: {1}]   ;;  %s1675_s6 = inlined_call_operand.vmem [shape: f32[2,1,8], index: 6, kind: output, shape index: {2}]  }
   0x1 LB: > { %s1084_s22 = sadd.s32 4294967295, %s1362_s21   ;;  %p1088_p0 = scmp.ge.s32.totalorder %s1362_s21, 1  ;;  %s1362_s21 = sphi %s1408_s21, %s17_s21  }
   0x2   : > { %p217_p1 = scmp.lt.s32.totalorder %s1362_s21, 3 }
   0x4   : > { %p218_p2 = pnand %p1088_p0, %p217_p1 }
   0x5   : > { %p253_p3 = scmp.lt.s32.totalorder (!%p218_p2), %s1084_s22, 1  ;;  %s1365_s7 = smov (!%p218_p2), 16  }
   0x6   : > { %221 = sbr.rel (%p218_p2) target bundleno = 440 (0x1b8), region = 36  ;;  %s1366_s8 = smov (!%p218_p2), 8  }
   0x7   : > { %s1367_s13 = smov (!%p218_p2), 24   ;;  %s1368_s16 = smov (!%p218_p2), 32  }
   0x8   : > { %s1369_s19 = smov (!%p218_p2), 40   ;;  %s1370_s25 = smov (!%p218_p2), 48  }
   0x9   : > { %s1372_s27 = smov (!%p218_p2), 64  }
   0xb   : > { %vm324_vm0 = vcmask 64512   ;;  %vm326_vm1 = vcmask 58368   ;;  %s1677_s22 = smov (!%p253_p3, %s1084_s22), 1  ;;  %v1364_v0 = vmov 0.0   ;;  %v1093_v1 = vld [vmem:[%s1670_s1] ss:$0 sm:$0xff] }
   0xc   : > { %325 = vst.msk [vmem:[#allocation2] sm:$0xff] %vm324_vm0, %v1364_v0  ;;  %328 = vst.msk [vmem:[#allocation2 + $0x10] sm:$0xff] %vm324_vm0, %v1364_v0  ;;  %s1110_s23 = sshll.u32 %s1677_s22, 5  ;;  %v1094_v10 = vld [vmem:[%s1671_s2] ss:$0 sm:$0xff]  ;;  %vm832_vm2 = vcmask 1043456   ;;  %s268_s11 = scalar_lea.vmem %s1675_s6, %s1677_s22 }
   0xd   : > { %327 = vst.msk [vmem:[#allocation2 + $0x8] sm:$0x3] %vm326_vm1, %v1364_v0  ;;  %329 = vst.msk [vmem:[#allocation2 + $0x18] sm:$0x3] %vm326_vm1, %v1364_v0  ;;  %s257_s26 = scalar_lea.vmem %s1669_s0, %s1110_s23  ;;  %v1351_v58 = vld [vmem:[%s1672_s3 + $0x20] ss:$0 sps:$4 sm:$0xff]   ;;  %s1624_s30 = scalar_lea.vmem %s1673_s4, %s1110_s23 }
   0xe   : > { %330 = vst.msk [vmem:[#allocation2 + $0x20] sm:$0xff] %vm324_vm0, %v1364_v0  ;;  %332 = vst.msk [vmem:[#allocation2 + $0x30] sm:$0xff] %vm324_vm0, %v1364_v0  ;;  %v1117_v2 = vld [vmem:[%s257_s26] sm:$0xff]   ;;  %v1132_v3 = vld [vmem:[%s257_s26 + $0x8] sm:$0xff]   ;;  %1172 = vmatprep.subr.msk.bf16.mxu0 %vm832_vm2, %v1351_v58  ;;  %v834_v60 = vsel %vm832_vm2, %v1351_v58, 0  ;;  %1173 = vmatprep.subr.msk.bf16.mxu1 %vm832_vm2, %v1351_v58  ;;  %vm692_vm3 = vcmask 130048  }
   0xf   : > { %331 = vst.msk [vmem:[#allocation2 + $0x28] sm:$0x3] %vm326_vm1, %v1364_v0  ;;  %333 = vst.msk [vmem:[#allocation2 + $0x38] sm:$0x3] %vm326_vm1, %v1364_v0  ;;  %v1133_v4 = vld [vmem:[%s257_s26 + $0x10] sm:$0xff]   ;;  %v1118_v5 = vunpack.c.l.bf16 %v1117_v2  ;;  %v1119_v6 = vunpack.c.h.bf16 %v1117_v2  ;;  %v1122_v7 = vunpack.c.l.bf16 %v1132_v3  ;;  %v1123_v8 = vunpack.c.h.bf16 %v1132_v3  ;;  %v1134_v9 = vld [vmem:[%s257_s26 + $0x18] sm:$0xff]   ;;  %1145 = vmatpush3.bf16.msra.mxu0 %v834_v60  ;;  %1167 = vmatpush3.bf16.msra.mxu1 %v834_v60 }
  0x10   : > { %334 = vst.msk [vmem:[#allocation2 + $0x40] sm:$0xff] %vm324_vm0, %v1364_v0  ;;  %336 = vst.msk [vmem:[#allocation2 + $0x50] sm:$0xff] %vm324_vm0, %v1364_v0  ;;  %v1126_v11 = vunpack.c.l.bf16 %v1133_v4  ;;  %v1127_v12 = vunpack.c.h.bf16 %v1133_v4  ;;  %v1130_v13 = vunpack.c.l.bf16 %v1134_v9  ;;  %v1131_v14 = vunpack.c.h.bf16 %v1134_v9  ;;  %v1352_v59 = vld [vmem:[%s1672_s3 + $0x18] sm:$0xff]   ;;  %v1354_v4 = vld [vmem:[%s1672_s3 + $0x8] sm:$0xff]   ;;  %s1371_s26 = smov 56  }
  0x11   : > { %335 = vst.msk [vmem:[#allocation2 + $0x48] sm:$0x3] %vm326_vm1, %v1364_v0  ;;  %337 = vst.msk [vmem:[#allocation2 + $0x58] sm:$0x3] %vm326_vm1, %v1364_v0  ;;  %v293_v15 = vmul.f32 %v1118_v5, %v1093_v1  ;;  %v294_v16 = vmul.f32 %v1119_v6, %v1093_v1  ;;  %v295_v17 = vmul.f32 %v1122_v7, %v1093_v1  ;;  %1146 = vmatprep.subr.bf16.mxu0 %v1352_v59  ;;  %vm701_vm4 = vcmask 195584  }
  0x12   : > { %338 = vst.msk [vmem:[#allocation2 + $0x60] sm:$0xff] %vm324_vm0, %v1364_v0  ;;  %340 = vst.msk [vmem:[#allocation2 + $0x70] sm:$0xff] %vm324_vm0, %v1364_v0  ;;  %v296_v18 = vmul.f32 %v1123_v8, %v1093_v1  ;;  %v297_v19 = vmul.f32 %v1126_v11, %v1093_v1  ;;  %v298_v20 = vmul.f32 %v1127_v12, %v1093_v1  ;;  %1163 = vmatprep.subr.bf16.mxu1 %v1352_v59  ;;  %v1355_v8 = vld [vmem:[%s1672_s3] sm:$0xff]   ;;  %vm710_vm5 = vcmask 261120  }
  0x13   : > { %339 = vst.msk [vmem:[#allocation2 + $0x68] sm:$0x3] %vm326_vm1, %v1364_v0  ;;  %341 = vst.msk [vmem:[#allocation2 + $0x78] sm:$0x3] %vm326_vm1, %v1364_v0  ;;  %v299_v21 = vmul.f32 %v1130_v13, %v1093_v1  ;;  %v300_v22 = vmul.f32 %v1131_v14, %v1093_v1  ;;  %v308_v23 = vadd.f32 %v1094_v10, %v293_v15  ;;  %1147 = vmatpush3.bf16.msra.mxu0 %v1352_v59  ;;  %vm719_vm6 = vcmask 326656  }
  0x14   : > { %342 = vst.msk [vmem:[#allocation2 + $0x80] sm:$0xff] %vm324_vm0, %v1364_v0  ;;  %344 = vst.msk [vmem:[#allocation2 + $0x90] sm:$0xff] %vm324_vm0, %v1364_v0  ;;  %v309_v24 = vadd.f32 %v1094_v10, %v294_v16  ;;  %v310_v25 = vadd.f32 %v1094_v10, %v295_v17  ;;  %v311_v26 = vadd.f32 %v1094_v10, %v296_v18  ;;  %v371_v39 = vld [vmem:[#allocation2 + $0x2] sm:$0xff]  ;;  %1168 = vmatpush3.bf16.msra.mxu1 %v1352_v59  ;;  %vm728_vm7 = vcmask 392192  }
  0x15   : > { %343 = vst.msk [vmem:[#allocation2 + $0x88] sm:$0x3] %vm326_vm1, %v1364_v0  ;;  %345 = vst.msk [vmem:[#allocation2 + $0x98] sm:$0x3] %vm326_vm1, %v1364_v0  ;;  %v312_v27 = vadd.f32 %v1094_v10, %v297_v19  ;;  %v313_v28 = vadd.f32 %v1094_v10, %v298_v20  ;;  %v314_v29 = vadd.f32 %v1094_v10, %v299_v21  ;;  %v316_v31 = vmax.f32 %v308_v23, 0.0  ;;  %v363_v40 = vld [vmem:[#allocation2 + $0x1] sm:$0xff] }
  0x16   : > { %v315_v30 = vadd.f32 %v1094_v10, %v300_v22  ;;  %v317_v32 = vmax.f32 %v309_v24, 0.0  ;;  %v318_v33 = vmax.f32 %v310_v25, 0.0  ;;  %v319_v34 = vmax.f32 %v311_v26, 0.0  ;;  %v1353_v0 = vld [vmem:[%s1672_s3 + $0x10] sm:$0xff]  }
  0x17   : > { %v320_v35 = vmax.f32 %v312_v27, 0.0  ;;  %v321_v36 = vmax.f32 %v313_v28, 0.0  ;;  %v322_v37 = vmax.f32 %v314_v29, 0.0  ;;  %347 = vst.msk [vmem:[#allocation2 + $0x11] sm:$0xff] %vm324_vm0, %v316_v31  ;;  %1148 = vmatprep.subr.bf16.mxu0 %v1353_v0  ;;  %1164 = vmatprep.subr.bf16.mxu1 %v1353_v0  ;;  %vm737_vm8 = vcmask 457728  }
  0x18   : > { %v323_v38 = vmax.f32 %v315_v30, 0.0  ;;  %348 = vst.msk [vmem:[#allocation2 + $0x21] sm:$0xff] %vm324_vm0, %v317_v32  ;;  %349 = vst.msk [vmem:[#allocation2 + $0x31] sm:$0xff] %vm324_vm0, %v318_v33  ;;  %1149 = vmatpush3.bf16.msra.mxu0 %v1353_v0  ;;  %1169 = vmatpush3.bf16.msra.mxu1 %v1353_v0  ;;  %vm746_vm9 = vcmask 523264   ;;  %vm819_vm10 = vcmask 588800   ;;  %vm909_vm11 = vcmask 60416  }
  0x19   : > { %350 = vst.msk [vmem:[#allocation2 + $0x41] sm:$0xff] %vm324_vm0, %v319_v34  ;;  %351 = vst.msk [vmem:[#allocation2 + $0x51] sm:$0xff] %vm324_vm0, %v320_v35  ;;  %1150 = vmatprep.subr.bf16.mxu0 %v1354_v4  ;;  %1165 = vmatprep.subr.bf16.mxu1 %v1354_v4  ;;  %vm947_vm12 = vcmask 57344  }
  0x1a   : > { %352 = vst.msk [vmem:[#allocation2 + $0x61] sm:$0xff] %vm324_vm0, %v321_v36  ;;  %353 = vst.msk [vmem:[#allocation2 + $0x71] sm:$0xff] %vm324_vm0, %v322_v37 }
  0x1b   : > { %354 = vst.msk [vmem:[#allocation2 + $0x81] sm:$0xff] %vm324_vm0, %v323_v38  ;;  %v411_v29 = vld [vmem:[#allocation2 + $0x90] sm:$0xff] }
  0x1c   : > { %1151 = vmatpush3.bf16.msra.mxu0 %v1354_v4  ;;  %1170 = vmatpush3.bf16.msra.mxu1 %v1354_v4  ;;  %v419_v32 = vld [vmem:[#allocation2 + $0x91] sm:$0xff] }
  0x1d   : > { %1152 = vmatprep.subr.bf16.mxu0 %v1355_v8  ;;  %1166 = vmatprep.subr.bf16.mxu1 %v1355_v8  ;;  %v427_v34 = vld [vmem:[#allocation2 + $0x92] sm:$0xff] }
  0x1e   : > { %v372_v41 = vld [vmem:[#allocation2 + $0x12] sm:$0xff] }
  0x1f   : > { %v364_v42 = vld [vmem:[#allocation2 + $0x11] sm:$0xff]  ;;  %v373_v43 = vld [vmem:[#allocation2 + $0x22] sm:$0xff]  ;;  %v1201_v44 = vpack.i.bf16 %v372_v41, %v371_v39 }
  0x20   : > { %v1191_v45 = vpack.i.bf16 %v364_v42, %v363_v40  ;;  %v374_v46 = vld [vmem:[#allocation2 + $0x32] sm:$0xff]  ;;  %v365_v47 = vld [vmem:[#allocation2 + $0x21] sm:$0xff]  ;;  %v1231_v2 = vpack.i.bf16 %v373_v43, %v372_v41  ;;  %1153 = vmatpush3.bf16.msra.mxu0 %v1355_v8  ;;  %1171 = vmatpush3.bf16.msra.mxu1 %v1355_v8 }
  0x21   : > { %v366_v48 = vld [vmem:[#allocation2 + $0x31] sm:$0xff]  ;;  %1202 = vrot.lane.b32.xlu1 %v1201_v44, %s1365_s7  ;;  %v1460_v49 = vpack.i.bf16 %v374_v46, %v373_v43  ;;  %v1464_v52 = vld [vmem:[#allocation2 + $0x40] sm:$0xff]  ;;  %v1221_v62 = vpack.i.bf16 %v365_v47, %v364_v42 }
  0x22   : > { %1192 = vrot.lane.b32.xlu0 %v1191_v45, %s1366_s8  ;;  %v1196_v50 = vpack.i.bf16 %v366_v48, %v365_v47  ;;  %v1462_v51 = vld [vmem:[#allocation2 + $0x30] sm:$0xff]  ;;  %v1468_v54 = vld [vmem:[#allocation2 + $0x20] sm:$0xff] }
  0x23   : > { %v1466_v53 = vld [vmem:[#allocation2 + $0x10] sm:$0xff]  ;;  %v1216_v55 = vpack.i.bf16 %v1464_v52, %v1462_v51  ;;  %v390_v57 = vld [vmem:[#allocation2 + $0x41] sm:$0xff]  ;;  %v1241_v6 = vpack.i.bf16 %v1462_v51, %v1468_v54 }
  0x24   : > { %v1211_v56 = vpack.i.bf16 %v1468_v54, %v1466_v53  ;;  %v1226_v61 = vpack.i.bf16 %v390_v57, %v366_v48  ;;  %v398_v63 = vld [vmem:[#allocation2 + $0x42] sm:$0xff]  ;;  %v1490_v3 = vld [vmem:[#allocation2 + $0x50] sm:$0xff] }
  0x25   : > { %1207 = vrot.lane.b32.xlu1 %v1460_v49, %s1365_s7  ;;  %v1236_v1 = vpack.i.bf16 %v398_v63, %v374_v46  ;;  %v1246_v5 = vpack.i.bf16 %v1490_v3, %v1464_v52  ;;  %v415_v7 = vld [vmem:[#allocation2 + $0x51] sm:$0xff]  ;;  %v369_v10 = vld [vmem:[#allocation2 + $0x61] sm:$0xff] }
  0x26   : > { %1197 = vrot.lane.b32.xlu0 %v1196_v50, %s1366_s8  ;;  %v1256_v9 = vpack.i.bf16 %v415_v7, %v390_v57  ;;  %v370_v11 = vld [vmem:[#allocation2 + $0x71] sm:$0xff]  ;;  %v377_v15 = vld [vmem:[#allocation2 + $0x62] sm:$0xff]  ;;  %v1301_v25 = vpack.i.bf16 %v369_v10, %v415_v7 }
  0x27   : > { %v423_v12 = vld [vmem:[#allocation2 + $0x52] sm:$0xff]  ;;  %v1276_v13 = vpack.i.bf16 %v370_v11, %v369_v10  ;;  %v386_v19 = vld [vmem:[#allocation2 + $0x80] sm:$0xff] }
  0x28   : > { %v1271_v14 = vpack.i.bf16 %v423_v12, %v398_v63  ;;  %v378_v16 = vld [vmem:[#allocation2 + $0x72] sm:$0xff]  ;;  %v1515_v20 = vld [vmem:[#allocation2 + $0x60] sm:$0xff]  ;;  %v1311_v28 = vpack.i.bf16 %v377_v15, %v423_v12  ;;  %v1326_v30 = vpack.i.bf16 %v411_v29, %v386_v19 }
  0x29   : > { %1217 = vrot.lane.b32.xlu1 %v1216_v55, %s1367_s13  ;;  %v1286_v17 = vpack.i.bf16 %v378_v16, %v377_v15  ;;  %v1513_v18 = vld [vmem:[#allocation2 + $0x70] sm:$0xff]  ;;  %v1291_v22 = vpack.i.bf16 %v1515_v20, %v1490_v3  ;;  %v394_v23 = vld [vmem:[#allocation2 + $0x81] sm:$0xff] }
  0x2a   : > { %1212 = vrot.lane.b32.xlu0 %v1211_v56, %s1367_s13  ;;  %v1296_v21 = vpack.i.bf16 %v386_v19, %v1513_v18  ;;  %v1306_v24 = vpack.i.bf16 %v394_v23, %v370_v11  ;;  %v402_v26 = vld [vmem:[#allocation2 + $0x82] sm:$0xff]  ;;  %v1321_v31 = vpack.i.bf16 %v1513_v18, %v1515_v20  ;;  %v1336_v33 = vpack.i.bf16 %v419_v32, %v394_v23 }
  0x2b   : > { %v1316_v27 = vpack.i.bf16 %v402_v26, %v378_v16  ;;  %v1346_v35 = vpack.i.bf16 %v427_v34, %v402_v26  ;;  %v355_v46 = vld [vmem:[#allocation2] sm:$0xff] }
  0x2d   : > { %1227 = vrot.lane.b32.xlu1 %v1226_v61, %s1368_s16 }
  0x2e   : > { %1222 = vrot.lane.b32.xlu0 %v1221_v62, %s1368_s16 }
  0x31   : > { %1237 = vrot.lane.b32.xlu1 %v1236_v1, %s1369_s19 }
  0x32   : > { %1232 = vrot.lane.b32.xlu0 %v1231_v2, %s1369_s19 }
  0x35   : > { %1247 = vrot.lane.b32.xlu1 %v1246_v5, %s1370_s25 }
  0x36   : > { %1242 = vrot.lane.b32.xlu0 %v1241_v6, %s1370_s25 }
  0x39   : > { %1257 = vrot.lane.b32.xlu1 %v1256_v9, %s1371_s26 }
  0x3a   : > { %1252 = vrot.lane.b32.xlu0 %v1196_v50, %s1371_s26 }
  0x3d   : > { %1267 = vrot.lane.b32.xlu1 %v1256_v9, %s1366_s8 }
  0x3e   : > { %1262 = vrot.lane.b32.xlu0 %v1460_v49, %s1372_s27 }
  0x41   : > { %1277 = vrot.lane.b32.xlu1 %v1276_v13, %s1366_s8  ;;  %s265_s8 = scalar_lea.vmem %s1674_s5, %s1677_s22 }
  0x42   : > { %1272 = vrot.lane.b32.xlu0 %v1271_v14, %s1372_s27 }
  0x45   : > { %1287 = vrot.lane.b32.xlu1 %v1286_v17, %s1365_s7 }
  0x46   : > { %1282 = vrot.lane.b32.xlu0 %v1271_v14, %s1365_s7 }
  0x49   : > { %1297 = vrot.lane.b32.xlu1 %v1296_v21, %s1367_s13 }
  0x4a   : > { %1292 = vrot.lane.b32.xlu0 %v1291_v22, %s1367_s13 }
  0x4d   : > { %1307 = vrot.lane.b32.xlu1 %v1306_v24, %s1368_s16 }
  0x4e   : > { %1302 = vrot.lane.b32.xlu0 %v1301_v25, %s1368_s16 }
  0x51   : > { %1317 = vrot.lane.b32.xlu1 %v1316_v27, %s1369_s19 }
  0x52   : > { %1312 = vrot.lane.b32.xlu0 %v1311_v28, %s1369_s19 }
  0x55   : > { %1327 = vrot.lane.b32.xlu1 %v1326_v30, %s1370_s25 }
  0x56   : > { %1322 = vrot.lane.b32.xlu0 %v1321_v31, %s1370_s25 }
  0x59   : > { %1337 = vrot.lane.b32.xlu1 %v1336_v33, %s1371_s26 }
  0x5a   : > { %1332 = vrot.lane.b32.xlu0 %v1276_v13, %s1371_s26 }
  0x5d   : > { %1347 = vrot.lane.b32.xlu1 %v1346_v35, %s1372_s27 }
  0x5e   : > { %1342 = vrot.lane.b32.xlu0 %v1286_v17, %s1372_s27 }
  0x93   : > { %v1203_v36 = vpop.permute.xlu1 %1202 }
  0x94   : > { %v1193_v37 = vpop.permute.xlu0 %1192  ;;  %v1205_v55 = vunpack.i.h.bf16 %v1203_v36  ;;  %v1204_v56 = vunpack.i.l.bf16 %v1203_v36 }
  0x95   : > { %v1195_v44 = vunpack.i.h.bf16 %v1193_v37  ;;  %v1194_v45 = vunpack.i.l.bf16 %v1193_v37 }
  0x97   : > { %v1208_v38 = vpop.permute.xlu1 %1207  ;;  %v684_v57 = vsel %vm324_vm0, %v355_v46, %v1194_v45  ;;  %v685_v58 = vsel %vm324_vm0, %v1466_v53, %v1195_v44 }
  0x98   : > { %v1198_v39 = vpop.permute.xlu0 %1197  ;;  %v1210_v59 = vunpack.i.h.bf16 %v1208_v38  ;;  %v1209_v60 = vunpack.i.l.bf16 %v1208_v38  ;;  %v693_v6 = vsel %vm692_vm3, %v684_v57, %v1204_v56  ;;  %v694_v53 = vsel %vm692_vm3, %v685_v58, %v1205_v55 }
  0x99   : > { %v1200_v47 = vunpack.i.h.bf16 %v1198_v39  ;;  %v1199_v48 = vunpack.i.l.bf16 %v1198_v39 }
  0x9b   : > { %v1218_v40 = vpop.permute.xlu1 %1217  ;;  %v687_v61 = vsel %vm324_vm0, %v1462_v51, %v1200_v47  ;;  %v686_v62 = vsel %vm324_vm0, %v1468_v54, %v1199_v48 }
  0x9c   : > { %v1213_v41 = vpop.permute.xlu0 %1212  ;;  %v1220_v63 = vunpack.i.h.bf16 %v1218_v40  ;;  %v1219_v0 = vunpack.i.l.bf16 %v1218_v40  ;;  %v695_v7 = vsel %vm692_vm3, %v686_v62, %v1209_v60  ;;  %v696_v51 = vsel %vm692_vm3, %v687_v61, %v1210_v59 }
  0x9d   : > { %v1215_v4 = vunpack.i.h.bf16 %v1213_v41  ;;  %v1214_v5 = vunpack.i.l.bf16 %v1213_v41 }
  0x9e   : > { %v704_v9 = vsel %vm701_vm4, %v695_v7, %v1219_v0  ;;  %v705_v10 = vsel %vm701_vm4, %v696_v51, %v1220_v63 }
  0x9f   : > { %v1536_v42 = vpop.permute.xlu1 %1227  ;;  %v702_v15 = vsel %vm701_vm4, %v693_v6, %v1214_v5  ;;  %v703_v16 = vsel %vm701_vm4, %v694_v53, %v1215_v4 }
  0xa0   : > { %v1223_v43 = vpop.permute.xlu0 %1222  ;;  %v1230_v21 = vunpack.i.h.bf16 %v1536_v42  ;;  %v1229_v22 = vunpack.i.l.bf16 %v1536_v42 }
  0xa1   : > { %v1225_v8 = vunpack.i.h.bf16 %v1223_v43  ;;  %v1224_v54 = vunpack.i.l.bf16 %v1223_v43 }
  0xa2   : > { %v713_v43 = vsel %vm710_vm5, %v704_v9, %v1229_v22  ;;  %v714_v44 = vsel %vm710_vm5, %v705_v10, %v1230_v21 }
  0xa3   : > { %v1538_v49 = vpop.permute.xlu1 %1237  ;;  %v711_v25 = vsel %vm710_vm5, %v702_v15, %v1224_v54  ;;  %v712_v26 = vsel %vm710_vm5, %v703_v16, %v1225_v8 }
  0xa4   : > { %v1233_v50 = vpop.permute.xlu0 %1232  ;;  %v1240_v27 = vunpack.i.h.bf16 %v1538_v49  ;;  %v1239_v28 = vunpack.i.l.bf16 %v1538_v49 }
  0xa5   : > { %v1235_v11 = vunpack.i.h.bf16 %v1233_v50  ;;  %v1234_v12 = vunpack.i.l.bf16 %v1233_v50 }
  0xa6   : > { %v722_v47 = vsel %vm719_vm6, %v713_v43, %v1239_v28  ;;  %v723_v48 = vsel %vm719_vm6, %v714_v44, %v1240_v27 }
  0xa7   : > { %v1248_v1 = vpop.permute.xlu1 %1247  ;;  %v720_v29 = vsel %vm719_vm6, %v711_v25, %v1234_v12  ;;  %v721_v30 = vsel %vm719_vm6, %v712_v26, %v1235_v11 }
  0xa8   : > { %v1243_v2 = vpop.permute.xlu0 %1242  ;;  %v1250_v31 = vunpack.i.h.bf16 %v1248_v1  ;;  %v1249_v32 = vunpack.i.l.bf16 %v1248_v1 }
  0xa9   : > { %v1245_v17 = vunpack.i.h.bf16 %v1243_v2  ;;  %v1244_v19 = vunpack.i.l.bf16 %v1243_v2 }
  0xaa   : > { %v731_v56 = vsel %vm728_vm7, %v722_v47, %v1249_v32  ;;  %v732_v57 = vsel %vm728_vm7, %v723_v48, %v1250_v31 }
  0xab   : > { %v1258_v13 = vpop.permute.xlu1 %1257  ;;  %v729_v35 = vsel %vm728_vm7, %v720_v29, %v1244_v19  ;;  %v730_v36 = vsel %vm728_vm7, %v721_v30, %v1245_v17 }
  0xac   : > { %v1253_v14 = vpop.permute.xlu0 %1252  ;;  %v1260_v39 = vunpack.i.h.bf16 %v1258_v13  ;;  %v1259_v40 = vunpack.i.l.bf16 %v1258_v13 }
  0xad   : > { %v1255_v23 = vunpack.i.h.bf16 %v1253_v14  ;;  %v1254_v24 = vunpack.i.l.bf16 %v1253_v14 }
  0xae   : > { %v740_v60 = vsel %vm737_vm8, %v731_v56, %v1259_v40  ;;  %v741_v61 = vsel %vm737_vm8, %v732_v57, %v1260_v39 }
  0xaf   : > { %v1268_v33 = vpop.permute.xlu1 %1267  ;;  %v738_v41 = vsel %vm737_vm8, %v729_v35, %v1254_v24  ;;  %v739_v42 = vsel %vm737_vm8, %v730_v36, %v1255_v23 }
  0xb0   : > { %v1263_v34 = vpop.permute.xlu0 %1262  ;;  %v1270_v7 = vunpack.i.h.bf16 %v1268_v33  ;;  %v1269_v51 = vunpack.i.l.bf16 %v1268_v33 }
  0xb1   : > { %v1265_v37 = vunpack.i.h.bf16 %v1263_v34  ;;  %v1264_v38 = vunpack.i.l.bf16 %v1263_v34 }
  0xb2   : > { %v689_v21 = vsel %vm324_vm0, %v1490_v3, %v1270_v7  ;;  %v688_v22 = vsel %vm324_vm0, %v1464_v52, %v1269_v51 }
  0xb3   : > { %v747_v45 = vsel %vm746_vm9, %v738_v41, %v1264_v38  ;;  %v748_v46 = vsel %vm746_vm9, %v739_v42, %v1265_v37  ;;  %v1278_v49 = vpop.permute.xlu1 %1277 }
  0xb4   : > { %v1273_v50 = vpop.permute.xlu0 %1272  ;;  %v1112_v55 = vpack.c.bf16 %v748_v46, %v747_v45  ;;  %v1280_v8 = vunpack.i.h.bf16 %v1278_v49  ;;  %v1279_v54 = vunpack.i.l.bf16 %v1278_v49 }
  0xb5   : > { %v1275_v58 = vunpack.i.h.bf16 %v1273_v50  ;;  %v1274_v59 = vunpack.i.l.bf16 %v1273_v50 }
  0xb6   : > { %1154 = vmatprep.mubr.msk.bf16.mxu0 %vm819_vm10, %v1112_v55  ;;  %v691_v23 = vsel %vm324_vm0, %v1513_v18, %v1280_v8  ;;  %v690_v24 = vsel %vm324_vm0, %v1515_v20, %v1279_v54 }
  0xb7   : > { %v749_v62 = vsel %vm746_vm9, %v740_v60, %v1274_v59  ;;  %v750_v63 = vsel %vm746_vm9, %v741_v61, %v1275_v58  ;;  %v1288_v1 = vpop.permute.xlu1 %1287 }
  0xb8   : > { %v1113_v0 = vpack.c.bf16 %v750_v63, %v749_v62  ;;  %v1283_v2 = vpop.permute.xlu0 %1282  ;;  %v1290_v9 = vunpack.i.h.bf16 %v1288_v1  ;;  %v1289_v10 = vunpack.i.l.bf16 %v1288_v1 }
  0xb9   : > { %v1285_v11 = vunpack.i.h.bf16 %v1283_v2  ;;  %v1284_v12 = vunpack.i.l.bf16 %v1283_v2 }
  0xba   : > { %1155 = vmatmul.mubr.msk.bf16.vlgmr.msra.gmra.mxu0 %vm819_vm10, %v1113_v0  ;;  %v699_v25 = vsel %vm692_vm3, %v690_v24, %v1289_v10  ;;  %v700_v26 = vsel %vm692_vm3, %v691_v23, %v1290_v9 }
  0xbb   : > { %v1298_v4 = vpop.permute.xlu1 %1297  ;;  %v698_v27 = vsel %vm692_vm3, %v689_v21, %v1285_v11  ;;  %v697_v28 = vsel %vm692_vm3, %v688_v22, %v1284_v12 }
  0xbc   : > { %v1293_v5 = vpop.permute.xlu0 %1292  ;;  %v1300_v15 = vunpack.i.h.bf16 %v1298_v4  ;;  %v1299_v16 = vunpack.i.l.bf16 %v1298_v4 }
  0xbd   : > { %v1295_v17 = vunpack.i.h.bf16 %v1293_v5  ;;  %v1294_v19 = vunpack.i.l.bf16 %v1293_v5 }
  0xbe   : > { %v708_v33 = vsel %vm701_vm4, %v699_v25, %v1299_v16  ;;  %v709_v18 = vsel %vm701_vm4, %v700_v26, %v1300_v15 }
  0xbf   : > { %v1308_v6 = vpop.permute.xlu1 %1307  ;;  %v706_v20 = vsel %vm701_vm4, %v697_v28, %v1294_v19  ;;  %v707_v34 = vsel %vm701_vm4, %v698_v27, %v1295_v17 }
  0xc0   : > { %v1303_v53 = vpop.permute.xlu0 %1302  ;;  %v1310_v3 = vunpack.i.h.bf16 %v1308_v6  ;;  %v1309_v31 = vunpack.i.l.bf16 %v1308_v6 }
  0xc1   : > { %v1305_v32 = vunpack.i.h.bf16 %v1303_v53  ;;  %v1304_v52 = vunpack.i.l.bf16 %v1303_v53 }
  0xc2   : > { %v717_v45 = vsel %vm710_vm5, %v708_v33, %v1309_v31  ;;  %v718_v46 = vsel %vm710_vm5, %v709_v18, %v1310_v3 }
  0xc3   : > { %v1318_v13 = vpop.permute.xlu1 %1317  ;;  %v715_v47 = vsel %vm710_vm5, %v706_v20, %v1304_v52  ;;  %v716_v48 = vsel %vm710_vm5, %v707_v34, %v1305_v32 }
  0xc4   : > { %v1313_v14 = vpop.permute.xlu0 %1312  ;;  %v1320_v35 = vunpack.i.h.bf16 %v1318_v13  ;;  %v1319_v36 = vunpack.i.l.bf16 %v1318_v13 }
  0xc5   : > { %v1315_v37 = vunpack.i.h.bf16 %v1313_v14  ;;  %v1314_v38 = vunpack.i.l.bf16 %v1313_v14 }
  0xc6   : > { %v726_v57 = vsel %vm719_vm6, %v717_v45, %v1319_v36  ;;  %v727_v58 = vsel %vm719_vm6, %v718_v46, %v1320_v35 }
  0xc7   : > { %v1328_v29 = vpop.permute.xlu1 %1327  ;;  %v724_v59 = vsel %vm719_vm6, %v715_v47, %v1314_v38  ;;  %v725_v60 = vsel %vm719_vm6, %v716_v48, %v1315_v37 }
  0xc8   : > { %v1323_v30 = vpop.permute.xlu0 %1322  ;;  %v1330_v39 = vunpack.i.h.bf16 %v1328_v29  ;;  %v1329_v40 = vunpack.i.l.bf16 %v1328_v29 }
  0xc9   : > { %v1325_v41 = vunpack.i.h.bf16 %v1323_v30  ;;  %v1324_v42 = vunpack.i.l.bf16 %v1323_v30 }
  0xca   : > { %v735_v61 = vsel %vm728_vm7, %v726_v57, %v1329_v40  ;;  %v736_v62 = vsel %vm728_vm7, %v727_v58, %v1330_v39 }
  0xcb   : > { %v1338_v43 = vpop.permute.xlu1 %1337  ;;  %v733_v63 = vsel %vm728_vm7, %v724_v59, %v1324_v42  ;;  %v734_v0 = vsel %vm728_vm7, %v725_v60, %v1325_v41 }
  0xcc   : > { %v1333_v44 = vpop.permute.xlu0 %1332  ;;  %v1340_v49 = vunpack.i.h.bf16 %v1338_v43  ;;  %v1339_v50 = vunpack.i.l.bf16 %v1338_v43 }
  0xcd   : > { %v1335_v55 = vunpack.i.h.bf16 %v1333_v44  ;;  %v1334_v56 = vunpack.i.l.bf16 %v1333_v44 }
  0xce   : > { %v744_v7 = vsel %vm737_vm8, %v735_v61, %v1339_v50  ;;  %v745_v51 = vsel %vm737_vm8, %v736_v62, %v1340_v49 }
  0xcf   : > { %v1348_v1 = vpop.permute.xlu1 %1347  ;;  %v742_v8 = vsel %vm737_vm8, %v733_v63, %v1334_v56  ;;  %v743_v54 = vsel %vm737_vm8, %v734_v0, %v1335_v55 }
  0xd0   : > { %v1343_v2 = vpop.permute.xlu0 %1342  ;;  %v1350_v4 = vunpack.i.h.bf16 %v1348_v1  ;;  %v1349_v5 = vunpack.i.l.bf16 %v1348_v1 }
  0xd1   : > { %v1345_v6 = vunpack.i.h.bf16 %v1343_v2  ;;  %v1344_v53 = vunpack.i.l.bf16 %v1343_v2 }
  0xd2   : > { %v753_v9 = vsel %vm746_vm9, %v744_v7, %v1349_v5  ;;  %v754_v10 = vsel %vm746_vm9, %v745_v51, %v1350_v4 }
  0xd3   : > { %v751_v11 = vsel %vm746_vm9, %v742_v8, %v1344_v53  ;;  %v752_v12 = vsel %vm746_vm9, %v743_v54, %v1345_v6  ;;  %v1115_v13 = vpack.c.bf16 %v754_v10, %v753_v9 }
  0xd4   : > { %v1114_v14 = vpack.c.bf16 %v752_v12, %v751_v11 }
  0xd6   : > { %1158 = vmatprep.mubr.msk.bf16.mxu1 %vm819_vm10, %v1114_v14 }
  0xd7   : > { %1159 = vmatmul.mubr.msk.bf16.vlgmr.msra.gmra.mxu1 %vm819_vm10, %v1115_v13 }
 0x17a   : > { %v1156_v15 = vpop.f32.mrf.mxu0 }
 0x17b   : > { %v903_v16 = vpack.c.bf16 %v1156_v15, %v1156_v15 }
 0x17c   : > { %v870_v17 = vpop.f32.mrf.mxu0 }
 0x17d   : > { %912 = vst.msk [vmem:[%s1624_s30 + $0x8] sm:$0xf] %vm909_vm11, %v903_v16  ;;  %v901_v19 = vpack.c.bf16 %v870_v17, %v870_v17  ;;  %v920_v28 = vunpack.c.l.bf16 %v903_v16 }
 0x17e   : > { %v1157_v21 = vpop.f32.mrf.mxu0 }
 0x17f   : > { %910 = vst.msk [vmem:[%s1624_s30] sm:$0xf] %vm909_vm11, %v901_v19  ;;  %v904_v22 = vpack.c.bf16 %v1157_v21, %v1157_v21  ;;  %v918_v26 = vunpack.c.l.bf16 %v901_v19  ;;  %v951_v18 = vmul.f32 %v920_v28, %v920_v28  ;;  %v929_v38 = vsel %vm324_vm0, %v920_v28, 0.0 }
 0x180   : > { %v873_v23 = vpop.f32.mrf.mxu0 }
 0x181   : > { %913 = vst.msk [vmem:[%s1624_s30 + $0xc] sm:$0xf] %vm909_vm11, %v904_v22  ;;  %v902_v24 = vpack.c.bf16 %v873_v23, %v873_v23  ;;  %v949_v29 = vmul.f32 %v918_v26, %v918_v26  ;;  %v926_v3 = vsel %vm324_vm0, %v918_v26, 0.0  ;;  %v921_v34 = vunpack.c.l.bf16 %v904_v22 }
 0x182   : > { %v960_v43 = vsel %vm324_vm0, %v951_v18, 0.0 }
 0x183   : > { %911 = vst.msk [vmem:[%s1624_s30 + $0x4] sm:$0xf] %vm909_vm11, %v902_v24  ;;  %v919_v25 = vunpack.c.l.bf16 %v902_v24  ;;  %v957_v20 = vsel %vm324_vm0, %v949_v29, 0.0  ;;  %v952_v44 = vmul.f32 %v921_v34, %v921_v34  ;;  %v931_v48 = vsel %vm324_vm0, %v921_v34, 0.0 }
 0x185   : > { %v950_v27 = vmul.f32 %v919_v25, %v919_v25  ;;  %v927_v30 = vsel %vm324_vm0, %v919_v25, 0.0  ;;  %v962_v57 = vsel %vm324_vm0, %v952_v44, 0.0 }
 0x186   : > { %v928_v52 = vadd.f32 %v927_v30, %v926_v3 }
 0x187   : > { %v958_v31 = vsel %vm324_vm0, %v950_v27, 0.0 }
 0x188   : > { %v959_v36 = vadd.f32 %v958_v31, %v957_v20  ;;  %v930_v40 = vadd.f32 %v929_v38, %v928_v52 }
 0x18a   : > { %v961_v46 = vadd.f32 %v960_v43, %v959_v36  ;;  %v932_v56 = vadd.f32 %v931_v48, %v930_v40 }
 0x18c   : > { %v963_v62 = vadd.f32 %v962_v57, %v961_v46 }
 0x197   : > { %v1160_v32 = vpop.f32.mrf.mxu1 }
 0x198   : > { %v907_v33 = vpack.c.bf16 %v1160_v32, %v1160_v32 }
 0x199   : > { %v886_v35 = vpop.f32.mrf.mxu1 }
 0x19a   : > { %916 = vst.msk [vmem:[%s1624_s30 + $0x18] sm:$0xf] %vm909_vm11, %v907_v33  ;;  %v905_v37 = vpack.c.bf16 %v886_v35, %v886_v35  ;;  %v924_v49 = vunpack.c.l.bf16 %v907_v33 }
 0x19b   : > { %v1161_v39 = vpop.f32.mrf.mxu1 }
 0x19c   : > { %914 = vst.msk [vmem:[%s1624_s30 + $0x10] sm:$0xf] %vm909_vm11, %v905_v37  ;;  %v922_v41 = vunpack.c.l.bf16 %v905_v37  ;;  %v908_v42 = vpack.c.bf16 %v1161_v39, %v1161_v39  ;;  %v955_v63 = vmul.f32 %v924_v49, %v924_v49  ;;  %v937_v5 = vsel %vm324_vm0, %v924_v49, 0.0 }
 0x19d   : > { %v889_v45 = vpop.f32.mrf.mxu1 }
 0x19e   : > { %v953_v47 = vmul.f32 %v922_v41, %v922_v41  ;;  %917 = vst.msk [vmem:[%s1624_s30 + $0x1c] sm:$0xf] %vm909_vm11, %v908_v42  ;;  %v933_v50 = vsel %vm324_vm0, %v922_v41, 0.0  ;;  %v906_v55 = vpack.c.bf16 %v889_v45, %v889_v45  ;;  %v925_v59 = vunpack.c.l.bf16 %v908_v42 }
 0x19f   : > { %v934_v61 = vadd.f32 %v933_v50, %v932_v56  ;;  %v968_v8 = vsel %vm324_vm0, %v955_v63, 0.0 }
 0x1a0   : > { %v964_v58 = vsel %vm324_vm0, %v953_v47, 0.0  ;;  %915 = vst.msk [vmem:[%s1624_s30 + $0x14] sm:$0xf] %vm909_vm11, %v906_v55  ;;  %v923_v60 = vunpack.c.l.bf16 %v906_v55  ;;  %v956_v6 = vmul.f32 %v925_v59, %v925_v59  ;;  %v939_v54 = vsel %vm324_vm0, %v925_v59, 0.0 }
 0x1a1   : > { %v965_v2 = vadd.f32 %v964_v58, %v963_v62 }
 0x1a2   : > { %v935_v0 = vsel %vm324_vm0, %v923_v60, 0.0  ;;  %v954_v1 = vmul.f32 %v923_v60, %v923_v60  ;;  %v970_v11 = vsel %vm324_vm0, %v956_v6, 0.0 }
 0x1a3   : > { %v936_v4 = vadd.f32 %v935_v0, %v934_v61 }
 0x1a4   : > { %v966_v53 = vsel %vm324_vm0, %v954_v1, 0.0 }
 0x1a5   : > { %v938_v7 = vadd.f32 %v937_v5, %v936_v4  ;;  %v967_v51 = vadd.f32 %v966_v53, %v965_v2 }
 0x1a7   : > { %v940_v9 = vadd.f32 %v939_v54, %v938_v7  ;;  %v969_v10 = vadd.f32 %v968_v8, %v967_v51 }
 0x1a9   : > { %v941_v12 = vrot.slane %v940_v9, 4  ;;  %v971_v13 = vadd.f32 %v970_v11, %v969_v10 }
 0x1ab   : > { %v942_v14 = vadd.f32 %v941_v12, %v940_v9  ;;  %v972_v15 = vrot.slane %v971_v13, 4 }
 0x1ad   : > { %v943_v16 = vrot.slane %v942_v14, 2  ;;  %v973_v17 = vadd.f32 %v972_v15, %v971_v13 }
 0x1af   : > { %v944_v19 = vadd.f32 %v943_v16, %v942_v14  ;;  %v974_v21 = vrot.slane %v973_v17, 2 }
 0x1b1   : > { %v945_v22 = vrot.slane %v944_v19, 1  ;;  %v975_v23 = vadd.f32 %v974_v21, %v973_v17 }
 0x1b3   : > { %v946_v24 = vadd.f32 %v945_v22, %v944_v19  ;;  %v976_v25 = vrot.slane %v975_v23, 1 }
 0x1b5   : > { %948 = vst.msk [vmem:[%s265_s8] sm:$0x1] %vm947_vm12, %v946_v24  ;;  %v977_v26 = vadd.f32 %v976_v25, %v975_v23 }
 0x1b7   : > { %978 = vst.msk [vmem:[%s268_s11] sm:$0x1] %vm947_vm12, %v977_v26 }
 0x1b8 PF: > { %s17_s21 = sadd.s32 1, %s1362_s21  }
 0x1b9   : > { %p14_p4 = scmp.ge.s32.totalorder %s17_s21, 4  }
 0x1bb   :  { %16 = sbr.rel (!%p14_p4) target bundleno = 1 (0x1), region = 92 }

</bundles_post_ra>
